<compile_context>
chip_gen: v6e
topology: v6e:2x2x1
jax: 0.10.0
libtpu: 0.0.40
codegen_flags: <defaults>
</compile_context>

<pallas_src>
import jax
import jax.numpy as jnp
from jax.experimental import pallas as pl
from jax.experimental.pallas import tpu as pltpu

# Real (PyTorch) layer widths.
D_IN, H1, H2, N_CLASSES = 784, 180, 50, 10
# Lane-padded widths (multiples of 128 -> lane-dense matmul N dims and output stores).
H1_PAD, H2_PAD, OUT_PAD = 256, 128, 128

# Batch tile: large enough to fill the MXU M dim and amortize per-step overhead,
# small enough (~8 MiB incl. double buffers + intermediates) for v7x's 64 MiB VMEM.
TILE_B_MAX = 1024


def _round_up(n, m):
    return (n + m - 1) // m * m


def mlp_kernel(x_ref, w1_ref, b1_ref, w2_ref, b2_ref, w3_ref, b3_ref, o_ref):
    # x tile: (TILE_B, 784) bf16. Weights are bf16 and resident across grid steps.
    x = x_ref[...]

    # Layer 1: bf16 MXU matmul with f32 accumulation; bias + ReLU in f32 (v5e-safe).
    h1 = jnp.dot(x, w1_ref[...], preferred_element_type=jnp.float32) + b1_ref[...]
    h1 = jnp.maximum(h1, 0.0)

    # Layer 2.
    h2 = jnp.dot(h1.astype(jnp.bfloat16), w2_ref[...],
                 preferred_element_type=jnp.float32) + b2_ref[...]
    h2 = jnp.maximum(h2, 0.0)

    # Output layer -> padded logits (TILE_B, 128).
    logits = jnp.dot(h2.astype(jnp.bfloat16), w3_ref[...],
                     preferred_element_type=jnp.float32) + b3_ref[...]

    # Mask the zero-padded logit columns so exp(.) contributes 0 to the denominator.
    col = jax.lax.broadcasted_iota(jnp.int32, logits.shape, 1)
    logits = jnp.where(col < N_CLASSES, logits, -1e30)

    # Numerically stable softmax. Exact divide: rows must sum to 1 to f32 precision
    # (the approx EUP reciprocal was the source of the previous correctness failure).
    m = jnp.max(logits, axis=-1, keepdims=True)
    e = jnp.exp(logits - m)
    denom = jnp.sum(e, axis=-1, keepdims=True)
    o_ref[...] = e / denom


def digit_classifier_forward(x, params):
    """x: (B, 784) float32 (or bf16). params: lane-padded bf16 weights / f32 biases
    (see prepare_params). Returns (B, 10) float32 class probabilities."""
    B = x.shape[0]
    tile_b = min(TILE_B_MAX, _round_up(B, 128))
    B_pad = _round_up(B, tile_b)

    x_bf16 = x.astype(jnp.bfloat16)
    if B_pad != B:
        x_bf16 = jnp.pad(x_bf16, ((0, B_pad - B), (0, 0)))

    grid = (B_pad // tile_b,)

    flops = 2 * B_pad * (D_IN * H1_PAD + H1_PAD * H2_PAD + H2_PAD * OUT_PAD)
    transcendentals = B_pad * OUT_PAD  # exp per padded logit
    bytes_accessed = (
        x_bf16.size * 2
        + (params["w1"].size + params["w2"].size + params["w3"].size) * 2
        + (params["b1"].size + params["b2"].size + params["b3"].size) * 4
        + B_pad * OUT_PAD * 4
    )

    out_padded = pl.pallas_call(
        mlp_kernel,
        out_shape=jax.ShapeDtypeStruct((B_pad, OUT_PAD), jnp.float32),
        grid=grid,
        in_specs=[
            pl.BlockSpec((tile_b, D_IN), lambda i: (i, 0)),    # x: tiled over batch
            pl.BlockSpec((D_IN, H1_PAD), lambda i: (0, 0)),    # weights/biases resident
            pl.BlockSpec((1, H1_PAD), lambda i: (0, 0)),
            pl.BlockSpec((H1_PAD, H2_PAD), lambda i: (0, 0)),
            pl.BlockSpec((1, H2_PAD), lambda i: (0, 0)),
            pl.BlockSpec((H2_PAD, OUT_PAD), lambda i: (0, 0)),
            pl.BlockSpec((1, OUT_PAD), lambda i: (0, 0)),
        ],
        out_specs=pl.BlockSpec((tile_b, OUT_PAD), lambda i: (i, 0)),
        compiler_params=pltpu.CompilerParams(
            dimension_semantics=("parallel",)),
        cost_estimate=pl.CostEstimate(
            flops=flops,
            transcendentals=transcendentals,
            bytes_accessed=bytes_accessed),
    )(
        x_bf16,
        params["w1"], params["b1"],
        params["w2"], params["b2"],
        params["w3"], params["b3"],
    )
    # Drop batch padding and the lane padding of the class dim.
    return out_padded[:B, :N_CLASSES]


def init_params(key):
    """Torch-style init (uniform +/- 1/sqrt(fan_in)) on the REAL shapes, stored (in, out)."""
    def linear(key, fan_in, fan_out):
        kw, kb = jax.random.split(key)
        bound = 1.0 / jnp.sqrt(float(fan_in))
        w = jax.random.uniform(kw, (fan_in, fan_out), jnp.float32, -bound, bound)
        b = jax.random.uniform(kb, (fan_out,), jnp.float32, -bound, bound)
        return w, b

    k1, k2, k3 = jax.random.split(key, 3)
    w1, b1 = linear(k1, D_IN, H1)
    w2, b2 = linear(k2, H1, H2)
    w3, b3 = linear(k3, H2, N_CLASSES)
    return {"w1": w1, "b1": b1, "w2": w2, "b2": b2, "w3": w3, "b3": b3}


def prepare_params(p):
    """Zero-pad weights/biases to lane-aligned widths and cast weights to bf16.

    Zero padding is exact through the ReLU layers (relu(0)=0 feeds zero columns into
    the next layer's zero-padded rows); the padded logit columns are masked to -1e30
    inside the kernel before the softmax. Biases stay f32 (elementwise path).
    """
    def pad_w(w, rows, cols):
        return jnp.pad(w, ((0, rows - w.shape[0]), (0, cols - w.shape[1]))).astype(jnp.bfloat16)

    def pad_b(b, cols):
        return jnp.pad(b, (0, cols - b.shape[0])).reshape(1, cols).astype(jnp.float32)

    return {
        "w1": pad_w(p["w1"], D_IN, H1_PAD), "b1": pad_b(p["b1"], H1_PAD),
        "w2": pad_w(p["w2"], H1_PAD, H2_PAD), "b2": pad_b(p["b2"], H2_PAD),
        "w3": pad_w(p["w3"], H2_PAD, OUT_PAD), "b3": pad_b(p["b3"], OUT_PAD),
    }


def reference_forward_f32(x, p):
    """Pure f32 reference matching the original torch module semantics."""
    h1 = jnp.maximum(x @ p["w1"] + p["b1"], 0.0)
    h2 = jnp.maximum(h1 @ p["w2"] + p["b2"], 0.0)
    return jax.nn.softmax(h2 @ p["w3"] + p["b3"], axis=-1)


def reference_forward_bf16(x, p):
    """Reference with the same bf16-matmul / f32-accumulate numerics as the kernel."""
    bf = jnp.bfloat16
    h1 = jnp.maximum(jnp.dot(x.astype(bf), p["w1"].astype(bf),
                             preferred_element_type=jnp.float32) + p["b1"], 0.0)
    h2 = jnp.maximum(jnp.dot(h1.astype(bf), p["w2"].astype(bf),
                             preferred_element_type=jnp.float32) + p["b2"], 0.0)
    logits = jnp.dot(h2.astype(bf), p["w3"].astype(bf),
                     preferred_element_type=jnp.float32) + p["b3"]
    return jax.nn.softmax(logits, axis=-1)


if __name__ == "__main__":
    key = jax.random.PRNGKey(0)
    kx, kp = jax.random.split(key)

    batch = 8
    x = jax.random.normal(kx, (batch, D_IN), dtype=jnp.float32)
    raw_params = init_params(kp)
    params = prepare_params(raw_params)

    out = digit_classifier_forward(x, params)
    out = jax.block_until_ready(out)

    assert out.shape == (batch, N_CLASSES)

    # Tight check vs a reference with matching bf16/f32 numerics.
    ref16 = reference_forward_bf16(x, raw_params)
    assert jnp.allclose(out, ref16, atol=1e-3, rtol=1e-3), \
        f"max |diff| vs bf16 ref = {jnp.max(jnp.abs(out - ref16))}"
    # Looser check vs the pure-f32 torch-equivalent math (bf16 matmul rounding).
    ref32 = reference_forward_f32(x, raw_params)
    assert jnp.allclose(out, ref32, atol=2e-2, rtol=2e-2), \
        f"max |diff| vs f32 ref = {jnp.max(jnp.abs(out - ref32))}"
    # Rows are valid probability distributions (exact divide -> f32 precision).
    assert jnp.allclose(jnp.sum(out, axis=-1), 1.0, atol=2e-3)

    print("KERNEL_OK")
</pallas_src>

<mosaic_0001>
module attributes {stable_mosaic.version = 11 : i64} {
  func.func @mlp_kernel(%arg0: i32, %arg1: memref<128x784xbf16, #tpu.memory_space<vmem>>, %arg2: memref<784x256xbf16, #tpu.memory_space<vmem>>, %arg3: memref<1x256xf32, #tpu.memory_space<vmem>>, %arg4: memref<256x128xbf16, #tpu.memory_space<vmem>>, %arg5: memref<1x128xf32, #tpu.memory_space<vmem>>, %arg6: memref<128x128xbf16, #tpu.memory_space<vmem>>, %arg7: memref<1x128xf32, #tpu.memory_space<vmem>>, %arg8: memref<128x128xf32, #tpu.memory_space<vmem>>) attributes {dimension_semantics = [#tpu.dimension_semantics<parallel>], iteration_bounds = array<i64: 1>, scalar_prefetch = 0 : i64, scratch_operands = 0 : i64, tpu.core_type = #tpu.core_type<tc>, window_params = [{transform_indices = @transform_0, window_bounds = array<i64: 128, 784>}, {pipeline_mode = #tpu.pipeline_mode<synchronous>, transform_indices = @transform_1, window_bounds = array<i64: 784, 256>}, {pipeline_mode = #tpu.pipeline_mode<synchronous>, transform_indices = @transform_2, window_bounds = array<i64: 1, 256>}, {pipeline_mode = #tpu.pipeline_mode<synchronous>, transform_indices = @transform_3, window_bounds = array<i64: 256, 128>}, {pipeline_mode = #tpu.pipeline_mode<synchronous>, transform_indices = @transform_4, window_bounds = array<i64: 1, 128>}, {pipeline_mode = #tpu.pipeline_mode<synchronous>, transform_indices = @transform_5, window_bounds = array<i64: 128, 128>}, {pipeline_mode = #tpu.pipeline_mode<synchronous>, transform_indices = @transform_6, window_bounds = array<i64: 1, 128>}, {transform_indices = @transform_7, window_bounds = array<i64: 128, 128>}]} {
    %c0 = arith.constant 0 : index
    %c0_0 = arith.constant 0 : index
    %0 = vector.load %arg1[%c0, %c0_0] : memref<128x784xbf16, #tpu.memory_space<vmem>>, vector<128x784xbf16>
    %c0_1 = arith.constant 0 : index
    %c0_2 = arith.constant 0 : index
    %1 = vector.load %arg2[%c0_1, %c0_2] : memref<784x256xbf16, #tpu.memory_space<vmem>>, vector<784x256xbf16>
    %cst = arith.constant dense<0.000000e+00> : vector<128x256xf32>
    %2 = tpu.matmul %0, %1, %cst {dimension_numbers = #tpu.dot_dimension_numbers<[1], [0], [0], [1], [0, 0, 1, 1], [], []>} : vector<128x784xbf16>, vector<784x256xbf16>, vector<128x256xf32> -> vector<128x256xf32>
    %c0_3 = arith.constant 0 : index
    %c0_4 = arith.constant 0 : index
    %3 = vector.load %arg3[%c0_3, %c0_4] : memref<1x256xf32, #tpu.memory_space<vmem>>, vector<1x256xf32>
    %4 = vector.broadcast %3 : vector<1x256xf32> to vector<128x256xf32>
    %5 = arith.addf %2, %4 : vector<128x256xf32>
    %cst_5 = arith.constant 0.000000e+00 : f32
    %6 = vector.broadcast %cst_5 : f32 to vector<128x256xf32>
    %7 = arith.maximumf %5, %6 : vector<128x256xf32>
    %8 = arith.truncf %7 : vector<128x256xf32> to vector<128x256xbf16>
    %c0_6 = arith.constant 0 : index
    %c0_7 = arith.constant 0 : index
    %9 = vector.load %arg4[%c0_6, %c0_7] : memref<256x128xbf16, #tpu.memory_space<vmem>>, vector<256x128xbf16>
    %cst_8 = arith.constant dense<0.000000e+00> : vector<128x128xf32>
    %10 = tpu.matmul %8, %9, %cst_8 {dimension_numbers = #tpu.dot_dimension_numbers<[1], [0], [0], [1], [0, 0, 1, 1], [], []>} : vector<128x256xbf16>, vector<256x128xbf16>, vector<128x128xf32> -> vector<128x128xf32>
    %c0_9 = arith.constant 0 : index
    %c0_10 = arith.constant 0 : index
    %11 = vector.load %arg5[%c0_9, %c0_10] : memref<1x128xf32, #tpu.memory_space<vmem>>, vector<1x128xf32>
    %12 = vector.broadcast %11 : vector<1x128xf32> to vector<128x128xf32>
    %13 = arith.addf %10, %12 : vector<128x128xf32>
    %cst_11 = arith.constant 0.000000e+00 : f32
    %14 = vector.broadcast %cst_11 : f32 to vector<128x128xf32>
    %15 = arith.maximumf %13, %14 : vector<128x128xf32>
    %16 = arith.truncf %15 : vector<128x128xf32> to vector<128x128xbf16>
    %c0_12 = arith.constant 0 : index
    %c0_13 = arith.constant 0 : index
    %17 = vector.load %arg6[%c0_12, %c0_13] : memref<128x128xbf16, #tpu.memory_space<vmem>>, vector<128x128xbf16>
    %cst_14 = arith.constant dense<0.000000e+00> : vector<128x128xf32>
    %18 = tpu.matmul %16, %17, %cst_14 {dimension_numbers = #tpu.dot_dimension_numbers<[1], [0], [0], [1], [0, 0, 1, 1], [], []>} : vector<128x128xbf16>, vector<128x128xbf16>, vector<128x128xf32> -> vector<128x128xf32>
    %c0_15 = arith.constant 0 : index
    %c0_16 = arith.constant 0 : index
    %19 = vector.load %arg7[%c0_15, %c0_16] : memref<1x128xf32, #tpu.memory_space<vmem>>, vector<1x128xf32>
    %20 = vector.broadcast %19 : vector<1x128xf32> to vector<128x128xf32>
    %21 = arith.addf %18, %20 : vector<128x128xf32>
    %22 = tpu.iota {dimensions = array<i32: 1>} : vector<128x128xi32>
    %c10_i32 = arith.constant 10 : i32
    %23 = vector.broadcast %c10_i32 : i32 to vector<128x128xi32>
    %24 = arith.cmpi slt, %22, %23 : vector<128x128xi32>
    %cst_17 = arith.constant -1.000000e+30 : f32
    %25 = vector.broadcast %cst_17 : f32 to vector<128x128xf32>
    %26 = arith.select %24, %21, %25 : vector<128x128xi1>, vector<128x128xf32>
    %cst_18 = arith.constant dense<0xFF800000> : vector<128xf32>
    %27 = vector.multi_reduction <maximumf>, %26, %cst_18 [1] : vector<128x128xf32> to vector<128xf32>
    %28 = vector.shape_cast %27 : vector<128xf32> to vector<128x1xf32>
    %29 = vector.broadcast %28 : vector<128x1xf32> to vector<128x128xf32>
    %30 = arith.subf %26, %29 : vector<128x128xf32>
    %31 = math.exp %30 : vector<128x128xf32>
    %cst_19 = arith.constant dense<0.000000e+00> : vector<128xf32>
    %32 = vector.multi_reduction <add>, %31, %cst_19 [1] : vector<128x128xf32> to vector<128xf32>
    %33 = vector.shape_cast %32 : vector<128xf32> to vector<128x1xf32>
    %34 = vector.broadcast %33 : vector<128x1xf32> to vector<128x128xf32>
    %35 = arith.divf %31, %34 : vector<128x128xf32>
    %c0_20 = arith.constant 0 : index
    %c0_21 = arith.constant 0 : index
    %36 = vector.load %arg8[%c0_20, %c0_21] : memref<128x128xf32, #tpu.memory_space<vmem>>, vector<128x128xf32>
    tpu.vector_store %arg8[%c0_20, %c0_21], %35 {strides = array<i32>} : memref<128x128xf32, #tpu.memory_space<vmem>>, vector<128x128xf32>,
    return
  }
  func.func @transform_0(%arg0: i32) -> (i32, i32) {
    %c0_i32 = arith.constant 0 : i32
    %c0_i32_0 = arith.constant 0 : i32
    return %arg0, %c0_i32 : i32, i32
  }
  func.func @transform_1(%arg0: i32) -> (i32, i32) {
    %c0_i32 = arith.constant 0 : i32
    %c0_i32_0 = arith.constant 0 : i32
    %c0_i32_1 = arith.constant 0 : i32
    return %c0_i32, %c0_i32_0 : i32, i32
  }
  func.func @transform_2(%arg0: i32) -> (i32, i32) {
    %c0_i32 = arith.constant 0 : i32
    %c0_i32_0 = arith.constant 0 : i32
    %c0_i32_1 = arith.constant 0 : i32
    return %c0_i32, %c0_i32_0 : i32, i32
  }
  func.func @transform_3(%arg0: i32) -> (i32, i32) {
    %c0_i32 = arith.constant 0 : i32
    %c0_i32_0 = arith.constant 0 : i32
    %c0_i32_1 = arith.constant 0 : i32
    return %c0_i32, %c0_i32_0 : i32, i32
  }
  func.func @transform_4(%arg0: i32) -> (i32, i32) {
    %c0_i32 = arith.constant 0 : i32
    %c0_i32_0 = arith.constant 0 : i32
    %c0_i32_1 = arith.constant 0 : i32
    return %c0_i32, %c0_i32_0 : i32, i32
  }
  func.func @transform_5(%arg0: i32) -> (i32, i32) {
    %c0_i32 = arith.constant 0 : i32
    %c0_i32_0 = arith.constant 0 : i32
    %c0_i32_1 = arith.constant 0 : i32
    return %c0_i32, %c0_i32_0 : i32, i32
  }
  func.func @transform_6(%arg0: i32) -> (i32, i32) {
    %c0_i32 = arith.constant 0 : i32
    %c0_i32_0 = arith.constant 0 : i32
    %c0_i32_1 = arith.constant 0 : i32
    return %c0_i32, %c0_i32_0 : i32, i32
  }
  func.func @transform_7(%arg0: i32) -> (i32, i32) {
    %c0_i32 = arith.constant 0 : i32
    %c0_i32_0 = arith.constant 0 : i32
    return %arg0, %c0_i32 : i32, i32
  }
}

</mosaic_0001>

<bundles_post_ra>
// kernel: tpu_custom_call.1
= control target key start
LH: loop header
LB: loop body
LE: loop exit
PB: predicated region body
PF: predicated region fallthrough
CT: control target
= control target key end

     0   :  { %12 = vsyncpa [#allocation3], 0  ;;  %s3814_s0 = inlined_call_operand.vmem [shape: bf16[128,784], index: 0, kind: input, shape index: {}]   ;;  %s3815_s1 = inlined_call_operand.vmem [shape: bf16[784,256], index: 1, kind: input, shape index: {}]   ;;  %s3816_s2 = inlined_call_operand.hbm [shape: f32[1,256], index: 2, kind: input, shape index: {}]   ;;  %s3817_s3 = inlined_call_operand.hbm [shape: bf16[256,128], index: 3, kind: input, shape index: {}]   ;;  %s3818_s4 = inlined_call_operand.vmem [shape: f32[1,128], index: 4, kind: input, shape index: {}]   ;;  %s3819_s5 = inlined_call_operand.vmem [shape: bf16[128,128], index: 5, kind: input, shape index: {}]   ;;  %s3820_s6 = inlined_call_operand.hbm [shape: f32[1,128], index: 6, kind: input, shape index: {}]   ;;  %s3821_s7 = inlined_call_operand.hbm [shape: f32[128,128], index: 7, kind: output, shape index: {}]  }
   0x1   :  { %13 = vsyncpa [#allocation6], 0 }
   0x2   :  { %14 = vsyncpa [#allocation4], 0  ;;  %s2897_s24 = smov [#allocation5]  }
   0x3   :  { %s34_s25 = sshll.u32 %s2897_s24, 4  ;;  %s35_s25 = int_to_ptr.vmem [resolvable:$true] %s34_s25 }
   0x4   :  { %s2819_s26 = scalar_lea.vmem %s35_s25, 2048  ;;  %p2824_p1 = scmp.lt.s32.totalorder %s35_s25, %s35_s25 }
   0x5   :  { %p2820_p0 = scmp.ne.s32.totalorder %s35_s25, %s2819_s26  ;;  %p2825_p2 = scmp.lt.s32.totalorder %s2819_s26, %s2819_s26 }
   0x7   :  { %p2826_p3 = por %p2825_p2, %p2824_p1 }
   0x9   :  { %p2827_p4 = pnand %p2826_p3, %p2820_p0 }
   0xb   :  { %2830 = shalt.err (!%p2827_p4)
}
   0xc   :  { %s2898_s27 = smov 64   ;;  %s2899_s28 = smov 4  }
   0xd   :  { %40 = dma.hbm_to_vmem [thread:$0]  %s3817_s3, 2048, %s35_s25, [#allocation6], %s2898_s27, %s2898_s27, %s2899_s28  }
   0xe   :  { %s2900_s8 = smov [#allocation2]   ;;  %s2901_s10 = smov [#allocation7]  }
   0xf   :  { %s25_s9 = sshll.u32 %s2900_s8, 4  ;;  %s51_s11 = sshll.u32 %s2901_s10, 4  ;;  %s26_s9 = int_to_ptr.vmem [resolvable:$true] %s25_s9  ;;  %s52_s11 = int_to_ptr.vmem [resolvable:$true] %s51_s11 }
  0x10   :  { %s2839_s12 = scalar_lea.vmem %s26_s9, 32  ;;  %p2844_p6 = scmp.lt.s32.totalorder %s26_s9, %s26_s9 }
  0x11   :  { %p2840_p5 = scmp.ne.s32.totalorder %s26_s9, %s2839_s12  ;;  %p2845_p7 = scmp.lt.s32.totalorder %s2839_s12, %s2839_s12 }
  0x13   :  { %p2846_p8 = por %p2845_p7, %p2844_p6 }
  0x15   :  { %p2847_p9 = pnand %p2846_p8, %p2840_p5 }
  0x17   :  { %2850 = shalt.err (!%p2847_p9)
}
  0x18   :  { %28 = dma.hbm_to_vmem [thread:$0]  %s3816_s2, 32, %s26_s9, [#allocation3]  }
  0x19   :  { %s2859_s15 = scalar_lea.vmem %s52_s11, 16  ;;  %s2863_s3 = scalar_lea.vmem %s52_s11, 32 }
  0x1a   :  { %p2860_p10 = scmp.ne.s32.totalorder %s52_s11, %s2859_s15  ;;  %p2864_p11 = scmp.lt.s32.totalorder %s52_s11, %s52_s11 }
  0x1b   :  { %p2865_p12 = scmp.lt.s32.totalorder %s2863_s3, %s2859_s15 }
  0x1d   :  { %p2866_p13 = por %p2865_p12, %p2864_p11 }
  0x1f   :  { %p2867_p0 = pnand %p2866_p13, %p2860_p10 }
  0x21   :  { %2870 = shalt.err (!%p2867_p0)
}
  0x22   :  { %54 = dma.hbm_to_vmem [thread:$0]  %s3820_s6, 16, %s52_s11, [#allocation6]  }
  0x23   :  { %2891 = dma.done.wait [#allocation3], 32  }
  0x24   :  { %2892 = vsyncadd [#allocation3], 4294967264 }
  0x25   :  { %2893 = dma.done.wait [#allocation6], 2064  }
  0x26   :  { %2894 = vsyncadd [#allocation6], 4294965232  ;;  %v2496_v0 = vld [vmem:[%s3815_s1 + $0x74] ss:$8 sps:$4 sm:$0xff]   ;;  %v2500_v2 = vld [vmem:[%s3815_s1 + $0x70] ss:$8 sps:$4 sm:$0xff]  }
  0x27   :  { %v2498_v1 = vld [vmem:[%s3815_s1 + $0x174] ss:$8 sps:$4 sm:$0xff]   ;;  %1034 = vmatprep.subr.bf16.mxu0 %v2496_v0  ;;  %v2501_v3 = vld [vmem:[%s3815_s1 + $0x170] ss:$8 sps:$4 sm:$0xff]   ;;  %v2502_v4 = vld [vmem:[%s3815_s1 + $0x64] ss:$8 sps:$4 sm:$0xff]  }
  0x28   :  { %1147 = vmatprep.subr.bf16.mxu1 %v2498_v1  ;;  %1035 = vmatpush1.bf16.msra.mxu0 %v2500_v2  ;;  %v2504_v5 = vld [vmem:[%s3815_s1 + $0x164] ss:$8 sps:$4 sm:$0xff]   ;;  %v2506_v6 = vld [vmem:[%s3815_s1 + $0x60] ss:$8 sps:$4 sm:$0xff]   ;;  %v2508_v8 = vld [vmem:[%s3815_s1 + $0x54] ss:$8 sps:$4 sm:$0xff]  }
  0x29   :  { %1148 = vmatpush1.bf16.msra.mxu1 %v2501_v3  ;;  %1036 = vmatprep.subr.bf16.mxu0 %v2502_v4  ;;  %v2507_v7 = vld [vmem:[%s3815_s1 + $0x160] ss:$8 sps:$4 sm:$0xff]   ;;  %v2510_v9 = vld [vmem:[%s3815_s1 + $0x154] ss:$8 sps:$4 sm:$0xff]   ;;  %v2512_v10 = vld [vmem:[%s3815_s1 + $0x50] ss:$8 sps:$4 sm:$0xff]  }
  0x2a   :  { %1149 = vmatprep.subr.bf16.mxu1 %v2504_v5  ;;  %v2513_v11 = vld [vmem:[%s3815_s1 + $0x150] ss:$8 sps:$4 sm:$0xff]   ;;  %v2514_v12 = vld [vmem:[%s3815_s1 + $0x44] ss:$8 sps:$4 sm:$0xff]   ;;  %v2518_v14 = vld [vmem:[%s3815_s1 + $0x40] ss:$8 sps:$4 sm:$0xff]  }
  0x2b   :  { %v2516_v13 = vld [vmem:[%s3815_s1 + $0x144] ss:$8 sps:$4 sm:$0xff]   ;;  %v2519_v15 = vld [vmem:[%s3815_s1 + $0x140] ss:$8 sps:$4 sm:$0xff]   ;;  %v2520_v16 = vld [vmem:[%s3815_s1 + $0x34] ss:$8 sps:$4 sm:$0xff]  }
  0x2c   :  { %1037 = vmatpush1.bf16.msra.mxu0 %v2506_v6  ;;  %v2522_v17 = vld [vmem:[%s3815_s1 + $0x134] ss:$8 sps:$4 sm:$0xff]   ;;  %v2524_v18 = vld [vmem:[%s3815_s1 + $0x30] ss:$8 sps:$4 sm:$0xff]   ;;  %v2526_v20 = vld [vmem:[%s3815_s1 + $0x24] ss:$8 sps:$4 sm:$0xff]  }
  0x2d   :  { %1150 = vmatpush1.bf16.msra.mxu1 %v2507_v7  ;;  %1038 = vmatprep.subr.bf16.mxu0 %v2508_v8  ;;  %v2525_v19 = vld [vmem:[%s3815_s1 + $0x130] ss:$8 sps:$4 sm:$0xff]   ;;  %v2528_v21 = vld [vmem:[%s3815_s1 + $0x124] ss:$8 sps:$4 sm:$0xff]   ;;  %v2530_v22 = vld [vmem:[%s3815_s1 + $0x20] ss:$8 sps:$4 sm:$0xff]  }
  0x2e   :  { %1151 = vmatprep.subr.bf16.mxu1 %v2510_v9  ;;  %v2531_v23 = vld [vmem:[%s3815_s1 + $0x120] ss:$8 sps:$4 sm:$0xff]   ;;  %v2532_v24 = vld [vmem:[%s3815_s1 + $0x14] ss:$8 sps:$4 sm:$0xff]   ;;  %v2536_v26 = vld [vmem:[%s3815_s1 + $0x10] ss:$8 sps:$4 sm:$0xff]  }
  0x2f   :  { %v2534_v25 = vld [vmem:[%s3815_s1 + $0x114] ss:$8 sps:$4 sm:$0xff]   ;;  %v2537_v27 = vld [vmem:[%s3815_s1 + $0x110] ss:$8 sps:$4 sm:$0xff]   ;;  %v2538_v28 = vld [vmem:[%s3815_s1 + $0x4] ss:$8 sps:$4 sm:$0xff]  }
  0x30   :  { %1039 = vmatpush1.bf16.msra.mxu0 %v2512_v10  ;;  %v2540_v29 = vld [vmem:[%s3815_s1 + $0x104] ss:$8 sps:$4 sm:$0xff]   ;;  %v2542_v30 = vld [vmem:[%s3815_s1] ss:$8 sps:$4 sm:$0xff]   ;;  %v2544_v32 = vld [vmem:[%s3815_s1 + $0xf4] ss:$8 sps:$4 sm:$0xff]  }
  0x31   :  { %1152 = vmatpush1.bf16.msra.mxu1 %v2513_v11  ;;  %1040 = vmatprep.subr.bf16.mxu0 %v2514_v12  ;;  %v2543_v31 = vld [vmem:[%s3815_s1 + $0x100] ss:$8 sps:$4 sm:$0xff]   ;;  %v2546_v33 = vld [vmem:[%s3815_s1 + $0x1f4] ss:$8 sps:$4 sm:$0xff]   ;;  %v2548_v34 = vld [vmem:[%s3815_s1 + $0xf0] ss:$8 sps:$4 sm:$0xff]  }
  0x32   :  { %1153 = vmatprep.subr.bf16.mxu1 %v2516_v13  ;;  %v2549_v35 = vld [vmem:[%s3815_s1 + $0x1f0] ss:$8 sps:$4 sm:$0xff]   ;;  %v2550_v36 = vld [vmem:[%s3815_s1 + $0xe4] ss:$8 sps:$4 sm:$0xff]   ;;  %v2554_v38 = vld [vmem:[%s3815_s1 + $0xe0] ss:$8 sps:$4 sm:$0xff]  }
  0x33   :  { %v2552_v37 = vld [vmem:[%s3815_s1 + $0x1e4] ss:$8 sps:$4 sm:$0xff]   ;;  %v2555_v39 = vld [vmem:[%s3815_s1 + $0x1e0] ss:$8 sps:$4 sm:$0xff]   ;;  %v2556_v40 = vld [vmem:[%s3815_s1 + $0xd4] ss:$8 sps:$4 sm:$0xff]  }
  0x34   :  { %1041 = vmatpush1.bf16.msra.mxu0 %v2518_v14  ;;  %v2558_v41 = vld [vmem:[%s3815_s1 + $0x1d4] ss:$8 sps:$4 sm:$0xff]   ;;  %v2560_v42 = vld [vmem:[%s3815_s1 + $0xd0] ss:$8 sps:$4 sm:$0xff]   ;;  %v2562_v44 = vld [vmem:[%s3815_s1 + $0xc4] ss:$8 sps:$4 sm:$0xff]  }
  0x35   :  { %1154 = vmatpush1.bf16.msra.mxu1 %v2519_v15  ;;  %1042 = vmatprep.subr.bf16.mxu0 %v2520_v16  ;;  %v2561_v43 = vld [vmem:[%s3815_s1 + $0x1d0] ss:$8 sps:$4 sm:$0xff]   ;;  %v2564_v45 = vld [vmem:[%s3815_s1 + $0x1c4] ss:$8 sps:$4 sm:$0xff]   ;;  %v2566_v46 = vld [vmem:[%s3815_s1 + $0xc0] ss:$8 sps:$4 sm:$0xff]  }
  0x36   :  { %1155 = vmatprep.subr.bf16.mxu1 %v2522_v17  ;;  %v2567_v47 = vld [vmem:[%s3815_s1 + $0x1c0] ss:$8 sps:$4 sm:$0xff]   ;;  %v2568_v48 = vld [vmem:[%s3815_s1 + $0xb4] ss:$8 sps:$4 sm:$0xff]   ;;  %v2572_v52 = vld [vmem:[%s3815_s1 + $0xb0] ss:$8 sps:$4 sm:$0xff]  }
  0x37   :  { %v2594_v49 = vld [vmem:[%s3814_s0 + $0x4] ss:$28 sps:$4 sm:$0xff]   ;;  %v2570_v50 = vld [vmem:[%s3815_s1 + $0x1b4] ss:$8 sps:$4 sm:$0xff]   ;;  %v2597_v51 = vld [vmem:[%s3814_s0 + $0xc] ss:$28 sps:$4 sm:$0xff]  }
  0x38   :  { %1043 = vmatpush1.bf16.msra.mxu0 %v2524_v18  ;;  %1066 = vmatprep.mubr.bf16.mxu0 %v2594_v49  ;;  %v2573_v53 = vld [vmem:[%s3815_s1 + $0x1b0] ss:$8 sps:$4 sm:$0xff]   ;;  %v2574_v54 = vld [vmem:[%s3815_s1 + $0xa4] ss:$8 sps:$4 sm:$0xff]   ;;  %v2578_v56 = vld [vmem:[%s3815_s1 + $0xa0] ss:$8 sps:$4 sm:$0xff]  }
  0x39   :  { %1156 = vmatpush1.bf16.msra.mxu1 %v2525_v19  ;;  %1044 = vmatprep.subr.bf16.mxu0 %v2526_v20  ;;  %v2576_v55 = vld [vmem:[%s3815_s1 + $0x1a4] ss:$8 sps:$4 sm:$0xff]   ;;  %v2579_v57 = vld [vmem:[%s3815_s1 + $0x1a0] ss:$8 sps:$4 sm:$0xff]   ;;  %v2580_v58 = vld [vmem:[%s3815_s1 + $0x94] ss:$8 sps:$4 sm:$0xff]  }
  0x3a   :  { %1157 = vmatprep.subr.bf16.mxu1 %v2528_v21  ;;  %1179 = vmatprep.mubr.bf16.mxu1 %v2597_v51  ;;  %v2582_v59 = vld [vmem:[%s3815_s1 + $0x194] ss:$8 sps:$4 sm:$0xff]   ;;  %v2584_v60 = vld [vmem:[%s3815_s1 + $0x90] ss:$8 sps:$4 sm:$0xff]   ;;  %v2586_v62 = vld [vmem:[%s3815_s1 + $0x84] ss:$8 sps:$4 sm:$0xff]  }
  0x3b   :  { %v2585_v61 = vld [vmem:[%s3815_s1 + $0x190] ss:$8 sps:$4 sm:$0xff]   ;;  %v2588_v63 = vld [vmem:[%s3815_s1 + $0x184] ss:$8 sps:$4 sm:$0xff]   ;;  %v2590_v0 = vld [vmem:[%s3815_s1 + $0x80] ss:$8 sps:$4 sm:$0xff]  }
  0x3c   :  { %1045 = vmatpush1.bf16.msra.mxu0 %v2530_v22  ;;  %v2591_v1 = vld [vmem:[%s3815_s1 + $0x180] ss:$8 sps:$4 sm:$0xff]   ;;  %v2600_v2 = vld [vmem:[%s3815_s1 + $0x274] ss:$8 sps:$4 sm:$0xff]   ;;  %v2598_v5 = vld [vmem:[%s3815_s1 + $0x270] ss:$8 sps:$4 sm:$0xff]  }
  0x3d   :  { %1158 = vmatpush1.bf16.msra.mxu1 %v2531_v23  ;;  %1046 = vmatprep.subr.bf16.mxu0 %v2532_v24  ;;  %v2592_v3 = vld [vmem:[%s3814_s0] ss:$28 sps:$4 sm:$0xff]   ;;  %v2595_v4 = vld [vmem:[%s3814_s0 + $0x8] ss:$28 sps:$4 sm:$0xff]   ;;  %v2608_v11 = vld [vmem:[%s3814_s0 + $0x38] ss:$28 sps:$4 sm:$0xff]  }
  0x3e   :  { %1159 = vmatprep.subr.bf16.mxu1 %v2534_v25  ;;  %v2603_v6 = vld [vmem:[%s3815_s1 + $0x264] ss:$8 sps:$4 sm:$0xff]   ;;  %v2604_v7 = vld [vmem:[%s3814_s0 + $0x3c] ss:$28 sps:$4 sm:$0xff]   ;;  %v2601_v9 = vld [vmem:[%s3815_s1 + $0x260] ss:$8 sps:$4 sm:$0xff]  }
  0x3f   :  { %v2606_v8 = vld [vmem:[%s3814_s0 + $0x44] ss:$28 sps:$4 sm:$0xff]   ;;  %v2612_v10 = vld [vmem:[%s3815_s1 + $0x254] ss:$8 sps:$4 sm:$0xff]   ;;  %v2610_v13 = vld [vmem:[%s3815_s1 + $0x250] ss:$8 sps:$4 sm:$0xff]  }
  0x40   :  { %1047 = vmatpush1.bf16.msra.mxu0 %v2536_v26  ;;  %v2609_v12 = vld [vmem:[%s3814_s0 + $0x40] ss:$28 sps:$4 sm:$0xff]   ;;  %v2615_v14 = vld [vmem:[%s3815_s1 + $0x244] ss:$8 sps:$4 sm:$0xff]   ;;  %v2616_v15 = vld [vmem:[%s3814_s0 + $0x74] ss:$28 sps:$4 sm:$0xff]  }
  0x41   :  { %1160 = vmatpush1.bf16.msra.mxu1 %v2537_v27  ;;  %1048 = vmatprep.subr.bf16.mxu0 %v2538_v28  ;;  %v2618_v16 = vld [vmem:[%s3814_s0 + $0x7c] ss:$28 sps:$4 sm:$0xff]   ;;  %v2613_v17 = vld [vmem:[%s3815_s1 + $0x240] ss:$8 sps:$4 sm:$0xff]   ;;  %v2620_v19 = vld [vmem:[%s3814_s0 + $0x70] ss:$28 sps:$4 sm:$0xff]  }
  0x42   :  { %1161 = vmatprep.subr.bf16.mxu1 %v2540_v29  ;;  %v2624_v18 = vld [vmem:[%s3815_s1 + $0x234] ss:$8 sps:$4 sm:$0xff]   ;;  %v2622_v21 = vld [vmem:[%s3815_s1 + $0x230] ss:$8 sps:$4 sm:$0xff]   ;;  %v2627_v22 = vld [vmem:[%s3815_s1 + $0x224] ss:$8 sps:$4 sm:$0xff]  }
  0x43   :  { %v2621_v20 = vld [vmem:[%s3814_s0 + $0x78] ss:$28 sps:$4 sm:$0xff]   ;;  %v2628_v23 = vld [vmem:[%s3814_s0 + $0xac] ss:$28 sps:$4 sm:$0xff]   ;;  %vm1009_vm0 = vcmask 130048  }
  0x44   :  { %1049 = vmatpush1.bf16.msra.mxu0 %v2542_v30  ;;  %v2630_v24 = vld [vmem:[%s3814_s0 + $0xb4] ss:$28 sps:$4 sm:$0xff]   ;;  %v2625_v25 = vld [vmem:[%s3815_s1 + $0x220] ss:$8 sps:$4 sm:$0xff]   ;;  %v2639_v30 = vld [vmem:[%s3815_s1 + $0x204] ss:$8 sps:$4 sm:$0xff]  }
  0x45   :  { %1162 = vmatpush1.bf16.msra.mxu1 %v2543_v31  ;;  %1050 = vmatprep.subr.bf16.mxu0 %v2544_v32  ;;  %v2636_v26 = vld [vmem:[%s3815_s1 + $0x214] ss:$8 sps:$4 sm:$0xff]   ;;  %v2632_v27 = vld [vmem:[%s3814_s0 + $0xa8] ss:$28 sps:$4 sm:$0xff]   ;;  %v2633_v28 = vld [vmem:[%s3814_s0 + $0xb0] ss:$28 sps:$4 sm:$0xff]  }
  0x46   :  { %1163 = vmatprep.subr.bf16.mxu1 %v2546_v33  ;;  %v2634_v29 = vld [vmem:[%s3815_s1 + $0x210] ss:$8 sps:$4 sm:$0xff]   ;;  %v2640_v31 = vld [vmem:[%s3814_s0 + $0xe4] ss:$28 sps:$4 sm:$0xff]   ;;  %v2642_v32 = vld [vmem:[%s3814_s0 + $0xec] ss:$28 sps:$4 sm:$0xff]  }
  0x47   :  { %v2637_v33 = vld [vmem:[%s3815_s1 + $0x200] ss:$8 sps:$4 sm:$0xff]   ;;  %v2668_v51 = vld [vmem:[%s3814_s0 + $0x150] ss:$28 sps:$4 sm:$0xff]  }
  0x48   :  { %1051 = vmatpush2.bf16.msra.mxu0 %v2548_v34  ;;  %v2648_v34 = vld [vmem:[%s3815_s1 + $0x2f4] ss:$8 sps:$4 sm:$0xff]   ;;  %v2661_v49 = vld [vmem:[%s3815_s1 + $0x2c0] ss:$8 sps:$4 sm:$0xff]  }
  0x49   :  { %1164 = vmatpush2.bf16.msra.mxu1 %v2549_v35  ;;  %1052 = vmatprep.subr.bf16.mxu0 %v2550_v36  ;;  %v2644_v35 = vld [vmem:[%s3814_s0 + $0xe0] ss:$28 sps:$4 sm:$0xff]   ;;  %v2645_v36 = vld [vmem:[%s3814_s0 + $0xe8] ss:$28 sps:$4 sm:$0xff]  }
  0x4a   :  { %1165 = vmatprep.subr.bf16.mxu1 %v2552_v37  ;;  %v2646_v37 = vld [vmem:[%s3815_s1 + $0x2f0] ss:$8 sps:$4 sm:$0xff]  }
  0x4c   :  { %1053 = vmatpush2.bf16.msra.mxu0 %v2554_v38  ;;  %v2651_v38 = vld [vmem:[%s3815_s1 + $0x2e4] ss:$8 sps:$4 sm:$0xff]  }
  0x4d   :  { %1166 = vmatpush2.bf16.msra.mxu1 %v2555_v39  ;;  %1054 = vmatprep.subr.bf16.mxu0 %v2556_v40  ;;  %v2652_v39 = vld [vmem:[%s3814_s0 + $0x11c] ss:$28 sps:$4 sm:$0xff]   ;;  %v2654_v40 = vld [vmem:[%s3814_s0 + $0x124] ss:$28 sps:$4 sm:$0xff]  }
  0x4e   :  { %1167 = vmatprep.subr.bf16.mxu1 %v2558_v41  ;;  %v2649_v41 = vld [vmem:[%s3815_s1 + $0x2e0] ss:$8 sps:$4 sm:$0xff]  }
  0x50   :  { %1055 = vmatpush2.bf16.msra.mxu0 %v2560_v42  ;;  %v2656_v42 = vld [vmem:[%s3814_s0 + $0x118] ss:$28 sps:$4 sm:$0xff]  }
  0x51   :  { %1168 = vmatpush2.bf16.msra.mxu1 %v2561_v43  ;;  %1056 = vmatprep.subr.bf16.mxu0 %v2562_v44  ;;  %v2660_v43 = vld [vmem:[%s3815_s1 + $0x2d4] ss:$8 sps:$4 sm:$0xff]  }
  0x52   :  { %1169 = vmatprep.subr.bf16.mxu1 %v2564_v45  ;;  %v2657_v44 = vld [vmem:[%s3814_s0 + $0x120] ss:$28 sps:$4 sm:$0xff]   ;;  %v2658_v45 = vld [vmem:[%s3815_s1 + $0x2d0] ss:$8 sps:$4 sm:$0xff]  }
  0x54   :  { %1057 = vmatpush2.bf16.msra.mxu0 %v2566_v46  ;;  %v2663_v46 = vld [vmem:[%s3815_s1 + $0x2c4] ss:$8 sps:$4 sm:$0xff]  }
  0x55   :  { %1170 = vmatpush2.bf16.msra.mxu1 %v2567_v47  ;;  %1058 = vmatprep.subr.bf16.mxu0 %v2568_v48  ;;  %v2664_v47 = vld [vmem:[%s3814_s0 + $0x154] ss:$28 sps:$4 sm:$0xff]   ;;  %v2666_v48 = vld [vmem:[%s3814_s0 + $0x15c] ss:$28 sps:$4 sm:$0xff]  }
  0x56   :  { %1171 = vmatprep.subr.bf16.mxu1 %v2570_v50  ;;  %v2672_v50 = vld [vmem:[%s3815_s1 + $0x2b4] ss:$8 sps:$4 sm:$0xff]  }
  0x58   :  { %1059 = vmatpush2.bf16.msra.mxu0 %v2572_v52  ;;  %v2669_v52 = vld [vmem:[%s3814_s0 + $0x158] ss:$28 sps:$4 sm:$0xff]  }
  0x59   :  { %1172 = vmatpush2.bf16.msra.mxu1 %v2573_v53  ;;  %1060 = vmatprep.subr.bf16.mxu0 %v2574_v54  ;;  %v2670_v53 = vld [vmem:[%s3815_s1 + $0x2b0] ss:$8 sps:$4 sm:$0xff]   ;;  %v2675_v54 = vld [vmem:[%s3815_s1 + $0x2a4] ss:$8 sps:$4 sm:$0xff]  }
  0x5a   :  { %1173 = vmatprep.subr.bf16.mxu1 %v2576_v55  ;;  %v2676_v55 = vld [vmem:[%s3814_s0 + $0x18c] ss:$28 sps:$4 sm:$0xff]  }
  0x5c   :  { %1061 = vmatpush2.bf16.msra.mxu0 %v2578_v56  ;;  %v2678_v56 = vld [vmem:[%s3814_s0 + $0x194] ss:$28 sps:$4 sm:$0xff]  }
  0x5d   :  { %1174 = vmatpush2.bf16.msra.mxu1 %v2579_v57  ;;  %1062 = vmatprep.subr.bf16.mxu0 %v2580_v58  ;;  %v2673_v57 = vld [vmem:[%s3815_s1 + $0x2a0] ss:$8 sps:$4 sm:$0xff]   ;;  %v2684_v58 = vld [vmem:[%s3815_s1 + $0x294] ss:$8 sps:$4 sm:$0xff]  }
  0x5e   :  { %1175 = vmatprep.subr.bf16.mxu1 %v2582_v59  ;;  %v2680_v59 = vld [vmem:[%s3814_s0 + $0x188] ss:$28 sps:$4 sm:$0xff]  }
  0x60   :  { %1063 = vmatpush2.bf16.msra.mxu0 %v2584_v60  ;;  %v2681_v60 = vld [vmem:[%s3814_s0 + $0x190] ss:$28 sps:$4 sm:$0xff]  }
  0x61   :  { %1176 = vmatpush2.bf16.msra.mxu1 %v2585_v61  ;;  %1064 = vmatprep.subr.bf16.mxu0 %v2586_v62  ;;  %v2682_v61 = vld [vmem:[%s3815_s1 + $0x290] ss:$8 sps:$4 sm:$0xff]   ;;  %v2687_v62 = vld [vmem:[%s3815_s1 + $0x284] ss:$8 sps:$4 sm:$0xff]  }
  0x62   :  { %1177 = vmatprep.subr.bf16.mxu1 %v2588_v63  ;;  %v2690_v63 = vld [vmem:[%s3814_s0 + $0x14] ss:$28 sps:$4 sm:$0xff]  }
  0x64   :  { %1065 = vmatpush2.bf16.msra.mxu0 %v2590_v0  ;;  %v2693_v0 = vld [vmem:[%s3814_s0 + $0x164] ss:$28 sps:$4 sm:$0xff]  }
  0x65   :  { %1178 = vmatpush2.bf16.msra.mxu1 %v2591_v1  ;;  %1260 = vmatprep.subr.bf16.mxu0 %v2600_v2  ;;  %v2685_v1 = vld [vmem:[%s3815_s1 + $0x280] ss:$8 sps:$4 sm:$0xff]  }
  0x66   :  { %2455 = vmatprep.subr.bf16.mxu1 %v2600_v2  ;;  %v2696_v2 = vld [vmem:[%s3815_s1 + $0x304] ss:$8 sps:$4 sm:$0xff]  }
  0x67   :  { %1067 = vmatmul.mubr.bf16.vlgmr.msra.gmra.mxu0 %v2592_v3  ;;  %v2688_v3 = vld [vmem:[%s3814_s0 + $0x10] ss:$28 sps:$4 sm:$0xff]  }
  0x68   :  { %1180 = vmatmul.mubr.bf16.vlgmr.msra.gmra.mxu1 %v2595_v4  ;;  %1261 = vmatpush1.bf16.msra.mxu0 %v2598_v5  ;;  %v2691_v4 = vld [vmem:[%s3814_s0 + $0x160] ss:$28 sps:$4 sm:$0xff]  }
  0x69   :  { %2471 = vmatpush1.bf16.msra.mxu1 %v2598_v5  ;;  %1262 = vmatprep.subr.bf16.mxu0 %v2603_v6  ;;  %v2694_v5 = vld [vmem:[%s3815_s1 + $0x300] ss:$8 sps:$4 sm:$0xff]  }
  0x6a   :  { %2456 = vmatprep.subr.bf16.mxu1 %v2603_v6  ;;  %1076 = vmatprep.mubr.bf16.mxu0 %v2604_v7  ;;  %v2697_v6 = vld [vmem:[%s3814_s0 + $0x4c] ss:$28 sps:$4 sm:$0xff]   ;;  %v2699_v7 = vld [vmem:[%s3814_s0 + $0x19c] ss:$28 sps:$4 sm:$0xff]  }
  0x6b   :  { %1189 = vmatprep.mubr.bf16.mxu1 %v2606_v8  ;;  %v2701_v8 = vld [vmem:[%s3814_s0 + $0x48] ss:$28 sps:$4 sm:$0xff]  }
  0x6c   :  { %1263 = vmatpush1.bf16.msra.mxu0 %v2601_v9 }
  0x6d   :  { %2472 = vmatpush1.bf16.msra.mxu1 %v2601_v9  ;;  %1264 = vmatprep.subr.bf16.mxu0 %v2612_v10  ;;  %v2702_v9 = vld [vmem:[%s3814_s0 + $0x198] ss:$28 sps:$4 sm:$0xff]  }
  0x6e   :  { %2457 = vmatprep.subr.bf16.mxu1 %v2612_v10  ;;  %v2703_v10 = vld [vmem:[%s3814_s0 + $0x84] ss:$28 sps:$4 sm:$0xff]  }
  0x6f   :  { %1077 = vmatmul.mubr.bf16.gmra.mxu0 %v2608_v11  ;;  %v2902_v11 = vmov 0  }
  0x70   :  { %1190 = vmatmul.mubr.bf16.gmra.mxu1 %v2609_v12  ;;  %1265 = vmatpush1.bf16.msra.mxu0 %v2610_v13  ;;  %v2705_v12 = vld [vmem:[%s3814_s0 + $0x80] ss:$28 sps:$4 sm:$0xff]  }
  0x71   :  { %2473 = vmatpush1.bf16.msra.mxu1 %v2610_v13  ;;  %1266 = vmatprep.subr.bf16.mxu0 %v2615_v14  ;;  %v2706_v13 = vld [vmem:[%s3814_s0 + $0x18] ss:$28 sps:$4 sm:$0xff]  }
  0x72   :  { %2458 = vmatprep.subr.bf16.mxu1 %v2615_v14  ;;  %1086 = vmatprep.mubr.bf16.mxu0 %v2616_v15  ;;  %v2707_v14 = vld [vmem:[%s3814_s0 + $0xbc] ss:$28 sps:$4 sm:$0xff]  }
  0x73   :  { %1199 = vmatprep.mubr.bf16.mxu1 %v2618_v16  ;;  %v2709_v15 = vld [vmem:[%s3814_s0 + $0xb8] ss:$28 sps:$4 sm:$0xff]   ;;  %v2710_v16 = vld [vmem:[%s3814_s0 + $0x50] ss:$28 sps:$4 sm:$0xff]  }
  0x74   :  { %1267 = vmatpush1.bf16.msra.mxu0 %v2613_v17 }
  0x75   :  { %2474 = vmatpush1.bf16.msra.mxu1 %v2613_v17  ;;  %1268 = vmatprep.subr.bf16.mxu0 %v2624_v18  ;;  %v2711_v17 = vld [vmem:[%s3814_s0 + $0xf4] ss:$28 sps:$4 sm:$0xff]  }
  0x76   :  { %2459 = vmatprep.subr.bf16.mxu1 %v2624_v18  ;;  %v2713_v18 = vld [vmem:[%s3814_s0 + $0xf0] ss:$28 sps:$4 sm:$0xff]  }
  0x77   :  { %1087 = vmatmul.mubr.bf16.gmra.mxu0 %v2620_v19  ;;  %v2714_v19 = vld [vmem:[%s3814_s0 + $0x88] ss:$28 sps:$4 sm:$0xff]  }
  0x78   :  { %1200 = vmatmul.mubr.bf16.gmra.mxu1 %v2621_v20  ;;  %1269 = vmatpush1.bf16.msra.mxu0 %v2622_v21  ;;  %v2715_v20 = vld [vmem:[%s3814_s0 + $0x12c] ss:$28 sps:$4 sm:$0xff]  }
  0x79   :  { %2475 = vmatpush1.bf16.msra.mxu1 %v2622_v21  ;;  %1270 = vmatprep.subr.bf16.mxu0 %v2627_v22  ;;  %v2717_v21 = vld [vmem:[%s3814_s0 + $0x128] ss:$28 sps:$4 sm:$0xff]  }
  0x7a   :  { %2460 = vmatprep.subr.bf16.mxu1 %v2627_v22  ;;  %1096 = vmatprep.mubr.bf16.mxu0 %v2628_v23  ;;  %v2718_v22 = vld [vmem:[%s3814_s0 + $0xc0] ss:$28 sps:$4 sm:$0xff]   ;;  %v2719_v23 = vld [vmem:[%s3814_s0 + $0xf8] ss:$28 sps:$4 sm:$0xff]  }
  0x7b   :  { %1209 = vmatprep.mubr.bf16.mxu1 %v2630_v24  ;;  %v2723_v24 = vld [vmem:[#allocation5 + $0x78] sm:$0xff]  }
  0x7c   :  { %1271 = vmatpush1.bf16.msra.mxu0 %v2625_v25 }
  0x7d   :  { %2476 = vmatpush1.bf16.msra.mxu1 %v2625_v25  ;;  %1272 = vmatprep.subr.bf16.mxu0 %v2636_v26  ;;  %v2724_v25 = vld [vmem:[#allocation5 + $0x38] sm:$0xff]  }
  0x7e   :  { %2461 = vmatprep.subr.bf16.mxu1 %v2636_v26  ;;  %v2720_v26 = vld [vmem:[%s3814_s0 + $0x130] ss:$28 sps:$4 sm:$0xff]  }
  0x7f   :  { %1097 = vmatmul.mubr.bf16.gmra.mxu0 %v2632_v27  ;;  %v2725_v27 = vld [vmem:[#allocation5 + $0x70] sm:$0xff]  }
  0x80   :  { %1210 = vmatmul.mubr.bf16.gmra.mxu1 %v2633_v28  ;;  %1273 = vmatpush1.bf16.msra.mxu0 %v2634_v29  ;;  %v2726_v28 = vld [vmem:[#allocation5 + $0x30] sm:$0xff]  }
  0x81   :  { %2477 = vmatpush1.bf16.msra.mxu1 %v2634_v29  ;;  %1274 = vmatprep.subr.bf16.mxu0 %v2639_v30  ;;  %v2721_v29 = vld [vmem:[%s3814_s0 + $0x168] ss:$28 sps:$4 sm:$0xff]  }
  0x82   :  { %2462 = vmatprep.subr.bf16.mxu1 %v2639_v30  ;;  %1106 = vmatprep.mubr.bf16.mxu0 %v2640_v31  ;;  %v2727_v30 = vld [vmem:[#allocation5 + $0x68] sm:$0xff]  }
  0x83   :  { %1219 = vmatprep.mubr.bf16.mxu1 %v2642_v32  ;;  %v2728_v31 = vld [vmem:[#allocation5 + $0x28] sm:$0xff]   ;;  %v2729_v32 = vld [vmem:[#allocation5 + $0x60] sm:$0xff]  }
  0x84   :  { %1275 = vmatpush1.bf16.msra.mxu0 %v2637_v33 }
  0x85   :  { %2478 = vmatpush1.bf16.msra.mxu1 %v2637_v33  ;;  %1276 = vmatprep.subr.bf16.mxu0 %v2648_v34  ;;  %v2730_v33 = vld [vmem:[#allocation5 + $0x20] sm:$0xff]  }
  0x86   :  { %2463 = vmatprep.subr.bf16.mxu1 %v2648_v34  ;;  %v2722_v34 = vld [vmem:[%s3814_s0 + $0x1a0] ss:$28 sps:$4 sm:$0xff]  }
  0x87   :  { %1107 = vmatmul.mubr.bf16.gmra.mxu0 %v2644_v35  ;;  %v2731_v35 = vld [vmem:[#allocation5 + $0x58] sm:$0xff]  }
  0x88   :  { %1220 = vmatmul.mubr.bf16.gmra.mxu1 %v2645_v36  ;;  %1277 = vmatpush2.bf16.msra.mxu0 %v2646_v37  ;;  %v2732_v36 = vld [vmem:[#allocation5 + $0x18] sm:$0xff]  }
  0x89   :  { %2479 = vmatpush2.bf16.msra.mxu1 %v2646_v37  ;;  %1278 = vmatprep.subr.bf16.mxu0 %v2651_v38  ;;  %v2733_v37 = vld [vmem:[#allocation5 + $0x50] sm:$0xff]  }
  0x8a   :  { %2464 = vmatprep.subr.bf16.mxu1 %v2651_v38  ;;  %1116 = vmatprep.mubr.bf16.mxu0 %v2652_v39  ;;  %v2734_v38 = vld [vmem:[#allocation5 + $0x10] sm:$0xff]   ;;  %v2735_v39 = vld [vmem:[#allocation5 + $0x48] sm:$0xff]  }
  0x8b   :  { %1229 = vmatprep.mubr.bf16.mxu1 %v2654_v40  ;;  %v2736_v40 = vld [vmem:[#allocation5 + $0x8] sm:$0xff]  }
  0x8c   :  { %1279 = vmatpush2.bf16.msra.mxu0 %v2649_v41 }
  0x8d   :  { %2480 = vmatpush2.bf16.msra.mxu1 %v2649_v41  ;;  %1280 = vmatprep.subr.bf16.mxu0 %v2660_v43  ;;  %v2737_v41 = vld [vmem:[#allocation5 + $0x40] sm:$0xff]  }
  0x8e   :  { %2465 = vmatprep.subr.bf16.mxu1 %v2660_v43  ;;  %v3822_v43 = vlaneseq }
  0x8f   :  { %1117 = vmatmul.mubr.bf16.gmra.mxu0 %v2656_v42  ;;  %v2738_v42 = vld [vmem:[#allocation5] sm:$0xff]  }
  0x90   :  { %1230 = vmatmul.mubr.bf16.gmra.mxu1 %v2657_v44  ;;  %1281 = vmatpush2.bf16.msra.mxu0 %v2658_v45  ;;  %v230_v44 = vshrl.u32 %v3822_v43, 7 }
  0x91   :  { %2481 = vmatpush2.bf16.msra.mxu1 %v2658_v45  ;;  %1282 = vmatprep.subr.bf16.mxu0 %v2663_v46 }
  0x92   :  { %2466 = vmatprep.subr.bf16.mxu1 %v2663_v46  ;;  %1126 = vmatprep.mubr.bf16.mxu0 %v2664_v47  ;;  %v231_v45 = vsub.s32 0, %v230_v44  ;;  %v227_v46 = vld [vmem:[#allocation2] sm:$0x3]  ;;  %v235_v47 = vsub.s32 1, %v230_v44 }
  0x93   :  { %1239 = vmatprep.mubr.bf16.mxu1 %v2666_v48 }
  0x94   :  { %1283 = vmatpush2.bf16.msra.mxu0 %v2661_v49  ;;  %v3426_v48 = vrot.slane %v227_v46, %v231_v45 }
  0x95   :  { %2482 = vmatpush2.bf16.msra.mxu1 %v2661_v49  ;;  %1284 = vmatprep.subr.bf16.mxu0 %v2672_v50  ;;  %v3428_v49 = vrot.slane %v227_v46, %v235_v47 }
  0x96   :  { %2467 = vmatprep.subr.bf16.mxu1 %v2672_v50 }
  0x97   :  { %1127 = vmatmul.mubr.bf16.gmra.mxu0 %v2668_v51 }
  0x98   :  { %1240 = vmatmul.mubr.bf16.gmra.mxu1 %v2669_v52  ;;  %1285 = vmatpush2.bf16.msra.mxu0 %v2670_v53 }
  0x99   :  { %2483 = vmatpush2.bf16.msra.mxu1 %v2670_v53  ;;  %1286 = vmatprep.subr.bf16.mxu0 %v2675_v54 }
  0x9a   :  { %2468 = vmatprep.subr.bf16.mxu1 %v2675_v54  ;;  %1136 = vmatprep.mubr.bf16.mxu0 %v2676_v55 }
  0x9b   :  { %1249 = vmatprep.mubr.bf16.mxu1 %v2678_v56 }
  0x9c   :  { %1287 = vmatpush2.bf16.msra.mxu0 %v2673_v57 }
  0x9d   :  { %2484 = vmatpush2.bf16.msra.mxu1 %v2673_v57  ;;  %1288 = vmatprep.subr.bf16.mxu0 %v2684_v58 }
  0x9e   :  { %2469 = vmatprep.subr.bf16.mxu1 %v2684_v58 }
  0x9f   :  { %1137 = vmatmul.mubr.bf16.gmra.mxu0 %v2680_v59 }
  0xa0   :  { %1250 = vmatmul.mubr.bf16.gmra.mxu1 %v2681_v60  ;;  %1289 = vmatpush2.bf16.msra.mxu0 %v2682_v61 }
  0xa1   :  { %2485 = vmatpush2.bf16.msra.mxu1 %v2682_v61  ;;  %1290 = vmatprep.subr.bf16.mxu0 %v2687_v62 }
  0xa2   :  { %2470 = vmatprep.subr.bf16.mxu1 %v2687_v62  ;;  %1292 = vmatprep.mubr.bf16.mxu0 %v2690_v63 }
  0xa3   :  { %1352 = vmatprep.mubr.bf16.mxu1 %v2693_v0 }
  0xa4   :  { %1291 = vmatpush2.bf16.msra.mxu0 %v2685_v1 }
  0xa5   :  { %2486 = vmatpush2.bf16.msra.mxu1 %v2685_v1  ;;  %2343 = vmatprep.subr.bf16.mxu0 %v2723_v24 }
  0xa6   :  { %1387 = vmatprep.subr.bf16.mxu1 %v2696_v2 }
  0xa7   :  { %1293 = vmatmul.mubr.bf16.vlgmr.msra.gmra.mxu0 %v2688_v3 }
  0xa8   :  { %1353 = vmatmul.mubr.bf16.vlgmr.msra.gmra.mxu1 %v2691_v4  ;;  %1302 = vmatprep.mubr.bf16.mxu0 %v2697_v6 }
  0xa9   :  { %1388 = vmatpush1.bf16.msra.mxu1 %v2694_v5  ;;  %1362 = vmatprep.mubr.bf16.mxu1 %v2699_v7 }
  0xaa   :  { %2344 = vmatpush3.bf16.msra.mxu0 %v2724_v25 }
  0xab   :  { %2345 = vmatprep.subr.bf16.mxu0 %v2725_v27 }
  0xae   :  { %2346 = vmatpush3.bf16.msra.mxu0 %v2726_v28 }
  0xaf   :  { %1303 = vmatmul.mubr.bf16.gmra.mxu0 %v2701_v8  ;;  %2347 = vmatprep.subr.bf16.mxu0 %v2727_v30 }
  0xb0   :  { %1363 = vmatmul.mubr.bf16.gmra.mxu1 %v2702_v9  ;;  %1312 = vmatprep.mubr.bf16.mxu0 %v2703_v10 }
  0xb1   :  { %1405 = vmatprep.mubr.bf16.mxu1 %v2902_v11 }
  0xb2   :  { %2348 = vmatpush3.bf16.msra.mxu0 %v2728_v31 }
  0xb3   :  { %2349 = vmatprep.subr.bf16.mxu0 %v2729_v32 }
  0xb6   :  { %2350 = vmatpush3.bf16.msra.mxu0 %v2730_v33 }
  0xb7   :  { %1313 = vmatmul.mubr.bf16.gmra.mxu0 %v2705_v12  ;;  %2351 = vmatprep.subr.bf16.mxu0 %v2731_v35 }
  0xb8   :  { %2309 = vmatmul.mubr.msk.bf16.vlgmr.msra.gmra.mxu1 %vm1009_vm0, %v2706_v13  ;;  %1322 = vmatprep.mubr.bf16.mxu0 %v2707_v14 }
  0xb9   :  { %1415 = vmatprep.mubr.bf16.mxu1 %v2902_v11 }
  0xba   :  { %2352 = vmatpush3.bf16.msra.mxu0 %v2732_v36 }
  0xbb   :  { %2353 = vmatprep.subr.bf16.mxu0 %v2733_v37 }
  0xbe   :  { %2354 = vmatpush3.bf16.msra.mxu0 %v2734_v38 }
  0xbf   :  { %1323 = vmatmul.mubr.bf16.gmra.mxu0 %v2709_v15  ;;  %2355 = vmatprep.subr.bf16.mxu0 %v2735_v39 }
  0xc0   :  { %2310 = vmatmul.mubr.msk.bf16.gmra.mxu1 %vm1009_vm0, %v2710_v16  ;;  %1332 = vmatprep.mubr.bf16.mxu0 %v2711_v17 }
  0xc1   :  { %1425 = vmatprep.mubr.bf16.mxu1 %v2902_v11 }
  0xc2   :  { %2356 = vmatpush3.bf16.msra.mxu0 %v2736_v40 }
  0xc3   :  { %2357 = vmatprep.subr.bf16.mxu0 %v2737_v41 }
  0xc6   :  { %2358 = vmatpush3.bf16.msra.mxu0 %v2738_v42 }
  0xc7   :  { %1333 = vmatmul.mubr.bf16.gmra.mxu0 %v2713_v18 }
  0xc8   :  { %2311 = vmatmul.mubr.msk.bf16.gmra.mxu1 %vm1009_vm0, %v2714_v19  ;;  %1342 = vmatprep.mubr.bf16.mxu0 %v2715_v20 }
  0xc9   :  { %1435 = vmatprep.mubr.bf16.mxu1 %v2902_v11 }
  0xcf   :  { %1343 = vmatmul.mubr.bf16.gmra.mxu0 %v2717_v21 }
  0xd0   :  { %2312 = vmatmul.mubr.msk.bf16.gmra.mxu1 %vm1009_vm0, %v2718_v22  ;;  %v2739_v22 = vld [vmem:[%s3819_s5 + $0x38] sm:$0xff]  }
  0xd1   :  { %1445 = vmatprep.mubr.bf16.mxu1 %v2902_v11  ;;  %2423 = vmatprep.subr.bf16.mxu1 %v2739_v22 }
  0xd2   :  { %2424 = vmatpush3.bf16.msra.mxu1 %v2739_v22 }
  0xd8   :  { %2313 = vmatmul.mubr.msk.bf16.gmra.mxu1 %vm1009_vm0, %v2719_v23  ;;  %v2740_v23 = vld [vmem:[%s3819_s5 + $0x30] sm:$0xff]  }
  0xd9   :  { %1455 = vmatprep.mubr.bf16.mxu1 %v2902_v11  ;;  %2425 = vmatprep.subr.bf16.mxu1 %v2740_v23 }
  0xda   :  { %2426 = vmatpush3.bf16.msra.mxu1 %v2740_v23 }
  0xe0   :  { %2314 = vmatmul.mubr.msk.bf16.gmra.mxu1 %vm1009_vm0, %v2720_v26 }
  0xe1   :  { %1465 = vmatprep.mubr.bf16.mxu1 %v2902_v11 }
  0xe8   :  { %2315 = vmatmul.mubr.msk.bf16.gmra.mxu1 %vm1009_vm0, %v2721_v29  ;;  %v2741_v29 = vld [vmem:[%s3819_s5 + $0x28] sm:$0xff]  }
  0xe9   :  { %1475 = vmatprep.mubr.bf16.mxu1 %v2902_v11  ;;  %2427 = vmatprep.subr.bf16.mxu1 %v2741_v29 }
  0xea   :  { %2428 = vmatpush3.bf16.msra.mxu1 %v2741_v29 }
  0xf0   :  { %2316 = vmatmul.mubr.msk.bf16.gmra.mxu1 %vm1009_vm0, %v2722_v34 }
 0x127   :  { %v1068_v50 = vpop.f32.mrf.mxu0 }
 0x128   :  { %v1181_v51 = vpop.f32.mrf.mxu1  ;;  %v1069_v52 = vadd.f32 %v1068_v50, %v3426_v48 }
 0x129   :  { %v1070_v53 = vpop.f32.mrf.mxu0 }
 0x12a   :  { %v1183_v54 = vpop.f32.mrf.mxu1  ;;  %v3431_v55 = vadd.f32 %v1181_v51, %v1069_v52  ;;  %v1071_v56 = vadd.f32 %v1070_v53, %v3428_v49 }
 0x12b   :  { %v3434_v57 = vpop.f32.mrf.mxu0 }
 0x12c   :  { %v3436_v58 = vpop.f32.mrf.mxu1  ;;  %v3438_v59 = vadd.f32 %v1183_v54, %v1071_v56 }
 0x12d   :  { %v3440_v60 = vpop.f32.mrf.mxu0 }
 0x12e   :  { %v3442_v61 = vpop.f32.mrf.mxu1 }
 0x12f   :  { %v1078_v62 = vpop.f32.mrf.mxu0 }
 0x130   :  { %v1191_v63 = vpop.f32.mrf.mxu1  ;;  %v1079_v0 = vadd.f32 %v1078_v62, %v3426_v48 }
 0x131   :  { %v1080_v1 = vpop.f32.mrf.mxu0 }
 0x132   :  { %v1193_v2 = vpop.f32.mrf.mxu1  ;;  %v3445_v3 = vadd.f32 %v1191_v63, %v1079_v0  ;;  %v1081_v4 = vadd.f32 %v1080_v1, %v3428_v49 }
 0x133   :  { %v3448_v5 = vpop.f32.mrf.mxu0 }
 0x134   :  { %v3450_v6 = vpop.f32.mrf.mxu1  ;;  %v3452_v7 = vadd.f32 %v1193_v2, %v1081_v4 }
 0x135   :  { %v3454_v8 = vpop.f32.mrf.mxu0 }
 0x136   :  { %v3456_v9 = vpop.f32.mrf.mxu1 }
 0x137   :  { %v1088_v10 = vpop.f32.mrf.mxu0 }
 0x138   :  { %v1201_v11 = vpop.f32.mrf.mxu1  ;;  %v1089_v12 = vadd.f32 %v1088_v10, %v3426_v48 }
 0x139   :  { %v1090_v13 = vpop.f32.mrf.mxu0 }
 0x13a   :  { %v1203_v14 = vpop.f32.mrf.mxu1  ;;  %v3459_v15 = vadd.f32 %v1201_v11, %v1089_v12  ;;  %v1091_v16 = vadd.f32 %v1090_v13, %v3428_v49 }
 0x13b   :  { %v3462_v17 = vpop.f32.mrf.mxu0 }
 0x13c   :  { %v3464_v18 = vpop.f32.mrf.mxu1  ;;  %v3466_v19 = vadd.f32 %v1203_v14, %v1091_v16 }
 0x13d   :  { %v3468_v20 = vpop.f32.mrf.mxu0 }
 0x13e   :  { %v3470_v21 = vpop.f32.mrf.mxu1 }
 0x13f   :  { %v1098_v24 = vpop.f32.mrf.mxu0 }
 0x140   :  { %v1211_v25 = vpop.f32.mrf.mxu1  ;;  %v1099_v26 = vadd.f32 %v1098_v24, %v3426_v48 }
 0x141   :  { %v1100_v27 = vpop.f32.mrf.mxu0 }
 0x142   :  { %v1213_v28 = vpop.f32.mrf.mxu1  ;;  %v3482_v30 = vadd.f32 %v1211_v25, %v1099_v26  ;;  %v1101_v31 = vadd.f32 %v1100_v27, %v3428_v49 }
 0x143   :  { %v3485_v32 = vpop.f32.mrf.mxu0 }
 0x144   :  { %v3487_v33 = vpop.f32.mrf.mxu1  ;;  %v3489_v34 = vadd.f32 %v1213_v28, %v1101_v31 }
 0x145   :  { %v3491_v35 = vpop.f32.mrf.mxu0 }
 0x146   :  { %v3493_v36 = vpop.f32.mrf.mxu1 }
 0x147   :  { %v1108_v37 = vpop.f32.mrf.mxu0 }
 0x148   :  { %v1221_v38 = vpop.f32.mrf.mxu1  ;;  %v1109_v39 = vadd.f32 %v1108_v37, %v3426_v48 }
 0x149   :  { %v1110_v40 = vpop.f32.mrf.mxu0 }
 0x14a   :  { %v1223_v41 = vpop.f32.mrf.mxu1  ;;  %v3496_v42 = vadd.f32 %v1221_v38, %v1109_v39  ;;  %v1111_v44 = vadd.f32 %v1110_v40, %v3428_v49 }
 0x14b   :  { %v3499_v45 = vpop.f32.mrf.mxu0 }
 0x14c   :  { %v3501_v46 = vpop.f32.mrf.mxu1  ;;  %v3503_v47 = vadd.f32 %v1223_v41, %v1111_v44 }
 0x14d   :  { %v3505_v50 = vpop.f32.mrf.mxu0 }
 0x14e   :  { %v3507_v51 = vpop.f32.mrf.mxu1 }
 0x14f   :  { %v1118_v52 = vpop.f32.mrf.mxu0 }
 0x150   :  { %v1231_v53 = vpop.f32.mrf.mxu1  ;;  %v1119_v54 = vadd.f32 %v1118_v52, %v3426_v48 }
 0x151   :  { %v1120_v56 = vpop.f32.mrf.mxu0 }
 0x152   :  { %v1233_v62 = vpop.f32.mrf.mxu1  ;;  %v3510_v63 = vadd.f32 %v1231_v53, %v1119_v54  ;;  %v1121_v0 = vadd.f32 %v1120_v56, %v3428_v49 }
 0x153   :  { %v3513_v1 = vpop.f32.mrf.mxu0 }
 0x154   :  { %v3515_v2 = vpop.f32.mrf.mxu1  ;;  %v3517_v4 = vadd.f32 %v1233_v62, %v1121_v0 }
 0x155   :  { %v3519_v10 = vpop.f32.mrf.mxu0 }
 0x156   :  { %v3521_v11 = vpop.f32.mrf.mxu1 }
 0x157   :  { %v1128_v12 = vpop.f32.mrf.mxu0 }
 0x158   :  { %v1241_v13 = vpop.f32.mrf.mxu1  ;;  %v1129_v14 = vadd.f32 %v1128_v12, %v3426_v48 }
 0x159   :  { %v1130_v16 = vpop.f32.mrf.mxu0 }
 0x15a   :  { %v1243_v22 = vpop.f32.mrf.mxu1  ;;  %v1242_v23 = vadd.f32 %v1241_v13, %v1129_v14  ;;  %v1131_v24 = vadd.f32 %v1130_v16, %v3428_v49 }
 0x15b   :  { %v1132_v25 = vpop.f32.mrf.mxu0 }
 0x15c   :  { %v1245_v26 = vpop.f32.mrf.mxu1  ;;  %v1244_v27 = vadd.f32 %v1243_v22, %v1131_v24  ;;  %v1133_v0 = vadd.f32 %v1132_v25, %v3426_v48 }
 0x15d   :  { %v3525_v28 = vpop.f32.mrf.mxu0 }
 0x15e   :  { %v3527_v29 = vpop.f32.mrf.mxu1  ;;  %v1246_v24 = vadd.f32 %v1245_v26, %v1133_v0  ;;  %v1073_v0 = vadd.f32 %v3434_v57, %v3426_v48 }
 0x15f   :  { %3823 = vst [vmem:[#allocation12_spill] sm:$0xff] %v3527_v29  ;;  %v1138_v31 = vpop.f32.mrf.mxu0 }
 0x160   :  { %v1251_v37 = vpop.f32.mrf.mxu1  ;;  %v1139_v38 = vadd.f32 %v1138_v31, %v3426_v48 }
 0x161   :  { %v1140_v39 = vpop.f32.mrf.mxu0 }
 0x162   :  { %v1253_v40 = vpop.f32.mrf.mxu1  ;;  %v1252_v41 = vadd.f32 %v1251_v37, %v1139_v38  ;;  %v1141_v44 = vadd.f32 %v1140_v39, %v3428_v49 }
 0x163   :  { %v1142_v52 = vpop.f32.mrf.mxu0 }
 0x164   :  { %v1255_v53 = vpop.f32.mrf.mxu1  ;;  %v1254_v54 = vadd.f32 %v1253_v40, %v1141_v44  ;;  %v1143_v43 = vadd.f32 %v1142_v52, %v3426_v48  ;;  %v1075_v52 = vadd.f32 %v3440_v60, %v3428_v49 }
 0x165   :  { %v3531_v56 = vpop.f32.mrf.mxu0 }
 0x166   :  { %3824 = vst [vmem:[#allocation13_spill] sm:$0xff] %v3531_v56  ;;  %v3533_v62 = vpop.f32.mrf.mxu1 }
 0x167   :  { %3825 = vst [vmem:[#allocation14_spill] sm:$0xff] %v3533_v62  ;;  %v1294_v12 = vpop.f32.mrf.mxu0 }
 0x168   :  { %v1354_v13 = vpop.f32.mrf.mxu1 }
 0x169   :  { %v3536_v14 = vadd.f32 %v1354_v13, %v1242_v23  ;;  %v1296_v16 = vpop.f32.mrf.mxu0 }
 0x16a   :  { %v1356_v22 = vpop.f32.mrf.mxu1  ;;  %v1297_v57 = vadd.f32 %v1296_v16, %v3438_v59 }
 0x16b   :  { %3826 = vst [vmem:[#allocation15_spill] sm:$0xff] %v3536_v14  ;;  %v3538_v31 = vadd.f32 %v1356_v22, %v1244_v27  ;;  %v1298_v37 = vpop.f32.mrf.mxu0  ;;  %v1256_v14 = vadd.f32 %v1255_v53, %v1143_v43  ;;  %v1295_v43 = vadd.f32 %v1294_v12, %v3431_v55 }
 0x16c   :  { %v1358_v38 = vpop.f32.mrf.mxu1 }
 0x16d   :  { %3827 = vst [vmem:[#allocation16_spill] sm:$0xff] %v3538_v31  ;;  %v3540_v39 = vadd.f32 %v1358_v38, %v1246_v24  ;;  %v1300_v40 = vpop.f32.mrf.mxu0 }
 0x16e   :  { %v3542_v44 = vpop.f32.mrf.mxu1 }
 0x16f   :  { %3828 = vst [vmem:[#allocation17_spill] sm:$0xff] %v3540_v39  ;;  %3829 = vst [vmem:[#allocation18_spill] sm:$0xff] %v3542_v44  ;;  %v1304_v62 = vpop.f32.mrf.mxu0 }
 0x170   :  { %v1364_v25 = vpop.f32.mrf.mxu1 }
 0x171   :  { %v3545_v56 = vadd.f32 %v1364_v25, %v1252_v41  ;;  %v1306_v23 = vpop.f32.mrf.mxu0 }
 0x172   :  { %v1366_v13 = vpop.f32.mrf.mxu1 }
 0x173   :  { %3830 = vst [vmem:[#allocation19_spill] sm:$0xff] %v3545_v56  ;;  %v3547_v29 = vadd.f32 %v1366_v13, %v1254_v54  ;;  %v1308_v26 = vpop.f32.mrf.mxu0  ;;  %v1186_v56 = vadd.f32 %v3436_v58, %v1073_v0  ;;  %v1188_v13 = vadd.f32 %v3442_v61, %v1075_v52  ;;  %v1085_v58 = vadd.f32 %v3454_v8, %v3428_v49 }
 0x174   :  { %v1368_v27 = vpop.f32.mrf.mxu1  ;;  %v1307_v8 = vadd.f32 %v1306_v23, %v3452_v7 }
 0x175   :  { %3831 = vst [vmem:[#allocation20_spill] sm:$0xff] %v3547_v29  ;;  %v3551_v22 = vadd.f32 %v1368_v27, %v1256_v14  ;;  %v1310_v24 = vpop.f32.mrf.mxu0  ;;  %v1299_v14 = vadd.f32 %v1298_v37, %v1186_v56  ;;  %v1301_v60 = vadd.f32 %v1300_v40, %v1188_v13  ;;  %v1305_v37 = vadd.f32 %v1304_v62, %v3445_v3 }
 0x176   :  { %v3553_v38 = vpop.f32.mrf.mxu1  ;;  %v1198_v40 = vadd.f32 %v3456_v9, %v1085_v58  ;;  %v1095_v62 = vadd.f32 %v3468_v20, %v3428_v49 }
 0x177   :  { %3832 = vst [vmem:[#allocation21_spill] sm:$0xff] %v3551_v22  ;;  %3833 = vst [vmem:[#allocation22_spill] sm:$0xff] %v3553_v38  ;;  %v1314_v41 = vpop.f32.mrf.mxu0  ;;  %v1083_v22 = vadd.f32 %v3448_v5, %v3426_v48 }
 0x178   :  { %v1407_v25 = vpop.f32.mrf.mxu1 }
 0x179   :  { %v1316_v53 = vpop.f32.mrf.mxu0  ;;  %v1408_v27 = vadd.f32 %v1407_v25, %v1295_v43  ;;  %v1196_v59 = vadd.f32 %v3450_v6, %v1083_v22 }
 0x17a   :  { %v1409_v54 = vpop.f32.mrf.mxu1  ;;  %v1317_v20 = vadd.f32 %v1316_v53, %v3466_v19 }
 0x17b   :  { %v1318_v29 = vpop.f32.mrf.mxu0  ;;  %v1410_v39 = vadd.f32 %v1409_v54, %v1297_v57  ;;  %v1486_v0 = vmax.f32 %v1408_v27, 0.0  ;;  %v1309_v54 = vadd.f32 %v1308_v26, %v1196_v59 }
 0x17c   :  { %v1411_v38 = vpop.f32.mrf.mxu1 }
 0x17d   :  { %v1412_v31 = vadd.f32 %v1411_v38, %v1299_v14  ;;  %v1320_v55 = vpop.f32.mrf.mxu0  ;;  %v1487_v5 = vmax.f32 %v1410_v39, 0.0  ;;  %v1311_v14 = vadd.f32 %v1310_v24, %v1198_v40 }
 0x17e   :  { %v1413_v12 = vpop.f32.mrf.mxu1 }
 0x17f   :  { %v1488_v44 = vmax.f32 %v1412_v31, 0.0  ;;  %v1414_v61 = vadd.f32 %v1413_v12, %v1301_v60  ;;  %v1324_v56 = vpop.f32.mrf.mxu0  ;;  %v1093_v31 = vadd.f32 %v3462_v17, %v3426_v48  ;;  %v1315_v17 = vadd.f32 %v1314_v41, %v3459_v15 }
 0x180   :  { %v1417_v16 = vpop.f32.mrf.mxu1  ;;  %v1105_v15 = vadd.f32 %v3491_v35, %v3428_v49 }
 0x181   :  { %v1518_v52 = vpack.c.bf16 %v1488_v44, %v1486_v0  ;;  %v1489_v25 = vmax.f32 %v1414_v61, 0.0  ;;  %v1326_v38 = vpop.f32.mrf.mxu0  ;;  %v1418_v57 = vadd.f32 %v1417_v16, %v1305_v37  ;;  %v1206_v26 = vadd.f32 %v3464_v18, %v1093_v31 }
 0x182   :  { %v1419_v43 = vpop.f32.mrf.mxu1  ;;  %v1208_v61 = vadd.f32 %v3470_v21, %v1095_v62  ;;  %v1327_v35 = vadd.f32 %v1326_v38, %v3489_v34 }
 0x183   :  { %v1519_v13 = vpack.c.bf16 %v1489_v25, %v1487_v5  ;;  %v1328_v6 = vpop.f32.mrf.mxu0  ;;  %v1420_v27 = vadd.f32 %v1419_v43, %v1307_v8  ;;  %v1490_v44 = vmax.f32 %v1418_v57, 0.0  ;;  %v1319_v37 = vadd.f32 %v1318_v29, %v1206_v26 }
 0x184   :  { %v1421_v22 = vpop.f32.mrf.mxu1  ;;  %v1103_v25 = vadd.f32 %v3485_v32, %v3426_v48  ;;  %v1321_v40 = vadd.f32 %v1320_v55, %v1208_v61  ;;  %v1325_v57 = vadd.f32 %v1324_v56, %v3482_v30  ;;  %v1115_v30 = vadd.f32 %v3505_v50, %v3428_v49 }
 0x185   :  { %v1422_v3 = vadd.f32 %v1421_v22, %v1309_v54  ;;  %1701 = vmatprep.mubr.bf16.mxu0 %v1519_v13  ;;  %v1330_v9 = vpop.f32.mrf.mxu0  ;;  %v1491_v12 = vmax.f32 %v1420_v27, 0.0  ;;  %v1218_v22 = vadd.f32 %v3493_v36, %v1105_v15 }
 0x186   :  { %v1423_v39 = vpop.f32.mrf.mxu1  ;;  %1702 = vmatmul.mubr.bf16.vlgmr.msra.gmra.mxu0 %v1518_v52  ;;  %v1216_v29 = vadd.f32 %v3487_v33, %v1103_v25 }
 0x187   :  { %v1492_v7 = vmax.f32 %v1422_v3, 0.0  ;;  %v1424_v23 = vadd.f32 %v1423_v39, %v1311_v14  ;;  %v1334_v60 = vpop.f32.mrf.mxu0  ;;  %v1331_v33 = vadd.f32 %v1330_v9, %v1218_v22 }
 0x188   :  { %v1427_v58 = vpop.f32.mrf.mxu1  ;;  %v1329_v3 = vadd.f32 %v1328_v6, %v1216_v29 }
 0x189   :  { %v1520_v24 = vpack.c.bf16 %v1492_v7, %v1490_v44  ;;  %v1493_v0 = vmax.f32 %v1424_v23, 0.0  ;;  %v1336_v59 = vpop.f32.mrf.mxu0  ;;  %v1428_v52 = vadd.f32 %v1427_v58, %v1315_v17  ;;  %v1113_v44 = vadd.f32 %v3499_v45, %v3426_v48 }
 0x18a   :  { %v1429_v16 = vpop.f32.mrf.mxu1  ;;  %v1337_v50 = vadd.f32 %v1336_v59, %v3503_v47 }
 0x18b   :  { %v1521_v5 = vpack.c.bf16 %v1493_v0, %v1491_v12  ;;  %v1430_v43 = vadd.f32 %v1429_v16, %v1317_v20  ;;  %v1338_v41 = vpop.f32.mrf.mxu0  ;;  %v1494_v54 = vmax.f32 %v1428_v52, 0.0  ;;  %v1226_v38 = vadd.f32 %v3501_v46, %v1113_v44  ;;  %v3834_v44 = vld [vmem:[#allocation12_spill] sm:$0xff] }
 0x18c   :  { %v1431_v18 = vpop.f32.mrf.mxu1  ;;  %v1335_v12 = vadd.f32 %v1334_v60, %v3496_v42  ;;  %v1228_v0 = vadd.f32 %v3507_v51, %v1115_v30  ;;  %v1123_v52 = vadd.f32 %v3513_v1, %v3426_v48  ;;  %v1125_v42 = vadd.f32 %v3519_v10, %v3428_v49 }
 0x18d   :  { %v1432_v8 = vadd.f32 %v1431_v18, %v1319_v37  ;;  %1709 = vmatprep.mubr.bf16.mxu0 %v1521_v5  ;;  %v1495_v32 = vmax.f32 %v1430_v43, 0.0  ;;  %v1340_v14 = vpop.f32.mrf.mxu0  ;;  %v1339_v20 = vadd.f32 %v1338_v41, %v1226_v38 }
 0x18e   :  { %v1433_v21 = vpop.f32.mrf.mxu1  ;;  %1710 = vmatmul.mubr.bf16.gmra.mxu0 %v1520_v24  ;;  %v1341_v46 = vadd.f32 %v1340_v14, %v1228_v0  ;;  %v1236_v59 = vadd.f32 %v3515_v2, %v1123_v52 }
 0x18f   :  { %v1496_v13 = vmax.f32 %v1432_v8, 0.0  ;;  %v1434_v19 = vadd.f32 %v1433_v21, %v1321_v40  ;;  %v1344_v56 = vpop.f32.mrf.mxu0 }
 0x190   :  { %v1437_v53 = vpop.f32.mrf.mxu1  ;;  %v1345_v41 = vadd.f32 %v1344_v56, %v3510_v63  ;;  %v1135_v63 = vadd.f32 %v3525_v28, %v3428_v49  ;;  %v3836_v56 = vld [vmem:[#allocation18_spill] sm:$0xff] }
 0x191   :  { %v1522_v31 = vpack.c.bf16 %v1496_v13, %v1494_v54  ;;  %v1497_v55 = vmax.f32 %v1434_v19, 0.0  ;;  %v1438_v39 = vadd.f32 %v1437_v53, %v1325_v57  ;;  %v1346_v61 = vpop.f32.mrf.mxu0  ;;  %v1238_v54 = vadd.f32 %v3521_v11, %v1125_v42 }
 0x192   :  { %v1439_v27 = vpop.f32.mrf.mxu1  ;;  %v1347_v10 = vadd.f32 %v1346_v61, %v3517_v4 }
 0x193   :  { %v1523_v62 = vpack.c.bf16 %v1497_v55, %v1495_v32  ;;  %v1440_v23 = vadd.f32 %v1439_v27, %v1327_v35  ;;  %v1498_v58 = vmax.f32 %v1438_v39, 0.0  ;;  %v1348_v60 = vpop.f32.mrf.mxu0 }
 0x194   :  { %v1441_v7 = vpop.f32.mrf.mxu1  ;;  %v1349_v29 = vadd.f32 %v1348_v60, %v1236_v59  ;;  %v3843_v60 = vld [vmem:[#allocation20_spill] sm:$0xff] }
 0x195   :  { %v1442_v26 = vadd.f32 %v1441_v7, %v1329_v3  ;;  %1717 = vmatprep.mubr.bf16.mxu0 %v1523_v62  ;;  %v1499_v45 = vmax.f32 %v1440_v23, 0.0  ;;  %v1350_v13 = vpop.f32.mrf.mxu0  ;;  %v1248_v7 = vadd.f32 %v3834_v44, %v1135_v63  ;;  %v3835_v23 = vld [vmem:[#allocation15_spill] sm:$0xff] }
 0x196   :  { %v1443_v36 = vpop.f32.mrf.mxu1  ;;  %1718 = vmatmul.mubr.bf16.gmra.mxu0 %v1522_v31  ;;  %v1351_v31 = vadd.f32 %v1350_v13, %v1238_v54  ;;  %v2742_v54 = vld [vmem:[%s3819_s5 + $0x20] sm:$0xff]   ;;  %v2743_v13 = vld [vmem:[%s3819_s5 + $0x18] sm:$0xff]  }
 0x197   :  { %v1500_v17 = vmax.f32 %v1442_v26, 0.0  ;;  %v1444_v34 = vadd.f32 %v1443_v36, %v1331_v33  ;;  %v1361_v36 = vadd.f32 %v3836_v56, %v1248_v7  ;;  %2429 = vmatprep.subr.bf16.mxu1 %v2742_v54 }
 0x198   :  { %v1447_v6 = vpop.f32.mrf.mxu1  ;;  %2430 = vmatpush3.bf16.msra.mxu1 %v2742_v54 }
 0x199   :  { %v1524_v24 = vpack.c.bf16 %v1500_v17, %v1498_v58  ;;  %v1501_v9 = vmax.f32 %v1444_v34, 0.0  ;;  %v1448_v5 = vadd.f32 %v1447_v6, %v1335_v12  ;;  %v3837_v58 = vld [vmem:[#allocation16_spill] sm:$0xff]  ;;  %v3838_v34 = vld [vmem:[#allocation17_spill] sm:$0xff]  ;;  %2431 = vmatprep.subr.bf16.mxu1 %v2743_v13 }
 0x19a   :  { %v1449_v16 = vpop.f32.mrf.mxu1  ;;  %v3839_v6 = vld [vmem:[#allocation13_spill] sm:$0xff] }
 0x19b   :  { %v1525_v37 = vpack.c.bf16 %v1501_v9, %v1499_v45  ;;  %v1450_v18 = vadd.f32 %v1449_v16, %v1337_v50  ;;  %v1502_v43 = vmax.f32 %v1448_v5, 0.0  ;;  %v1145_v12 = vadd.f32 %v3839_v6, %v3428_v49 }
 0x19c   :  { %v1451_v25 = vpop.f32.mrf.mxu1  ;;  %2432 = vmatpush3.bf16.msra.mxu1 %v2743_v13 }
 0x19d   :  { %v1452_v40 = vadd.f32 %v1451_v25, %v1339_v20  ;;  %1725 = vmatprep.mubr.bf16.mxu0 %v1525_v37  ;;  %v1503_v48 = vmax.f32 %v1450_v18, 0.0  ;;  %v3840_v37 = vld [vmem:[#allocation14_spill] sm:$0xff]  ;;  %v3841_v25 = vld [vmem:[#allocation19_spill] sm:$0xff] }
 0x19e   :  { %v1453_v51 = vpop.f32.mrf.mxu1  ;;  %1726 = vmatmul.mubr.bf16.gmra.mxu0 %v1524_v24  ;;  %v1258_v5 = vadd.f32 %v3840_v37, %v1145_v12 }
 0x19f   :  { %v1504_v8 = vmax.f32 %v1452_v40, 0.0  ;;  %v1454_v47 = vadd.f32 %v1453_v51, %v1341_v46  ;;  %v3842_v40 = vld [vmem:[#allocation22_spill] sm:$0xff] }
 0x1a0   :  { %v1457_v15 = vpop.f32.mrf.mxu1  ;;  %v1371_v42 = vadd.f32 %v3842_v40, %v1258_v5 }
 0x1a1   :  { %v1526_v1 = vpack.c.bf16 %v1504_v8, %v1502_v43  ;;  %v1505_v21 = vmax.f32 %v1454_v47, 0.0  ;;  %v1458_v57 = vadd.f32 %v1457_v15, %v1345_v41  ;;  %v3844_v43 = vld [vmem:[#allocation21_spill] sm:$0xff] }
 0x1a2   :  { %v1459_v19 = vpop.f32.mrf.mxu1 }
 0x1a3   :  { %v1527_v53 = vpack.c.bf16 %v1505_v21, %v1503_v48  ;;  %v1460_v55 = vadd.f32 %v1459_v19, %v1347_v10  ;;  %v1506_v14 = vmax.f32 %v1458_v57, 0.0  ;;  %v2744_v19 = vld [vmem:[%s3819_s5 + $0x10] sm:$0xff]   ;;  %v2745_v10 = vld [vmem:[%s3819_s5 + $0x8] sm:$0xff]  }
 0x1a4   :  { %v1461_v32 = vpop.f32.mrf.mxu1  ;;  %2433 = vmatprep.subr.bf16.mxu1 %v2744_v19 }
 0x1a5   :  { %v1462_v22 = vadd.f32 %v1461_v32, %v1349_v29  ;;  %1733 = vmatprep.mubr.bf16.mxu0 %v1527_v53  ;;  %v1507_v3 = vmax.f32 %v1460_v55, 0.0  ;;  %2434 = vmatpush3.bf16.msra.mxu1 %v2744_v19  ;;  %v2746_v29 = vld [vmem:[%s3819_s5] sm:$0xff]  }
 0x1a6   :  { %v1463_v2 = vpop.f32.mrf.mxu1  ;;  %1734 = vmatmul.mubr.bf16.gmra.mxu0 %v1526_v1  ;;  %2435 = vmatprep.subr.bf16.mxu1 %v2745_v10 }
 0x1a7   :  { %v1508_v27 = vmax.f32 %v1462_v22, 0.0  ;;  %v1464_v11 = vadd.f32 %v1463_v2, %v1351_v31  ;;  %v3633_v31 = vld [vmem:[%s3818_s4] ss:$0 sm:$0xff]  ;;  %s2903_s4 = smov [#allocation8]  }
 0x1a8   :  { %v1467_v35 = vpop.f32.mrf.mxu1  ;;  %s2142_s5 = sshll.u32 %s2903_s4, 4  ;;  %s2143_s5 = int_to_ptr.vmem [resolvable:$true] %s2142_s5 }
 0x1a9   :  { %v1528_v62 = vpack.c.bf16 %v1508_v27, %v1506_v14  ;;  %v1509_v4 = vmax.f32 %v1464_v11, 0.0  ;;  %v1468_v26 = vadd.f32 %v1467_v35, %v3835_v23  ;;  %2436 = vmatpush3.bf16.msra.mxu1 %v2745_v10  ;;  %s2871_s27 = scalar_lea.vmem %s2143_s5, 2048  ;;  %p2876_p2 = scmp.lt.s32.totalorder %s2143_s5, %s2143_s5 }
 0x1aa   :  { %v1469_v39 = vpop.f32.mrf.mxu1  ;;  %2437 = vmatprep.subr.bf16.mxu1 %v2746_v29  ;;  %p2872_p1 = scmp.ne.s32.totalorder %s2143_s5, %s2871_s27  ;;  %p2877_p3 = scmp.lt.s32.totalorder %s2871_s27, %s2871_s27 }
 0x1ab   :  { %v1529_v33 = vpack.c.bf16 %v1509_v4, %v1507_v3  ;;  %v1470_v17 = vadd.f32 %v1469_v39, %v3837_v58  ;;  %v1510_v45 = vmax.f32 %v1468_v26, 0.0 }
 0x1ac   :  { %v1471_v30 = vpop.f32.mrf.mxu1  ;;  %p2878_p4 = por %p2877_p3, %p2876_p2 }
 0x1ad   :  { %v1472_v28 = vadd.f32 %v1471_v30, %v3838_v34  ;;  %1741 = vmatprep.mubr.bf16.mxu0 %v1529_v33  ;;  %v1511_v61 = vmax.f32 %v1470_v17, 0.0  ;;  %2438 = vmatpush3.bf16.msra.mxu1 %v2746_v29 }
 0x1ae   :  { %v1473_v38 = vpop.f32.mrf.mxu1  ;;  %1742 = vmatmul.mubr.bf16.gmra.mxu0 %v1528_v62  ;;  %p2879_p5 = pnand %p2878_p4, %p2872_p1 }
 0x1af   :  { %v1512_v24 = vmax.f32 %v1472_v28, 0.0  ;;  %v1474_v9 = vadd.f32 %v1473_v38, %v1361_v36 }
 0x1b0   :  { %v1477_v0 = vpop.f32.mrf.mxu1 }
 0x1b1   :  { %v1530_v16 = vpack.c.bf16 %v1512_v24, %v1510_v45  ;;  %v1513_v50 = vmax.f32 %v1474_v9, 0.0  ;;  %v1478_v46 = vadd.f32 %v1477_v0, %v3841_v25 }
 0x1b2   :  { %v1479_v20 = vpop.f32.mrf.mxu1 }
 0x1b3   :  { %v1531_v52 = vpack.c.bf16 %v1513_v50, %v1511_v61  ;;  %v1480_v51 = vadd.f32 %v1479_v20, %v3843_v60  ;;  %v1514_v47 = vmax.f32 %v1478_v46, 0.0 }
 0x1b4   :  { %v1481_v18 = vpop.f32.mrf.mxu1 }
 0x1b5   :  { %v1482_v49 = vadd.f32 %v1481_v18, %v3844_v43  ;;  %1749 = vmatprep.mubr.bf16.mxu0 %v1531_v52  ;;  %v1515_v41 = vmax.f32 %v1480_v51, 0.0 }
 0x1b6   :  { %v1483_v8 = vpop.f32.mrf.mxu1  ;;  %1750 = vmatmul.mubr.bf16.gmra.mxu0 %v1530_v16 }
 0x1b7   :  { %v1516_v59 = vmax.f32 %v1482_v49, 0.0  ;;  %v1484_v15 = vadd.f32 %v1483_v8, %v1371_v42 }
 0x1b9   :  { %v1532_v48 = vpack.c.bf16 %v1516_v59, %v1514_v47  ;;  %v1517_v1 = vmax.f32 %v1484_v15, 0.0 }
 0x1bb   :  { %v1533_v21 = vpack.c.bf16 %v1517_v1, %v1515_v41 }
 0x1bd   :  { %1757 = vmatprep.mubr.bf16.mxu0 %v1533_v21 }
 0x1be   :  { %1758 = vmatmul.mubr.bf16.gmra.mxu0 %v1532_v48 }
 0x246   :  { %v2359_v53 = vpop.f32.mrf.mxu0 }
 0x248   :  { %v2360_v57 = vpop.f32.mrf.mxu0 }
 0x249   :  { %v2361_v32 = vadd.f32 %v2360_v57, %v2359_v53 }
 0x24a   :  { %v2362_v55 = vpop.f32.mrf.mxu0 }
 0x24b   :  { %v1704_v2 = vadd.f32 %v2361_v32, %v3633_v31 }
 0x24c   :  { %v2363_v22 = vpop.f32.mrf.mxu0 }
 0x24d   :  { %v2364_v63 = vadd.f32 %v2363_v22, %v2362_v55  ;;  %v1766_v35 = vmax.f32 %v1704_v2, 0.0 }
 0x24e   :  { %v2365_v14 = vpop.f32.mrf.mxu0 }
 0x24f   :  { %v1707_v27 = vadd.f32 %v2364_v63, %v3633_v31 }
 0x250   :  { %v2366_v11 = vpop.f32.mrf.mxu0 }
 0x251   :  { %v1767_v3 = vmax.f32 %v1707_v27, 0.0  ;;  %v2367_v62 = vadd.f32 %v2366_v11, %v2365_v14 }
 0x252   :  { %v2368_v4 = vpop.f32.mrf.mxu0 }
 0x253   :  { %v1782_v39 = vpack.c.bf16 %v1767_v3, %v1766_v35  ;;  %v1712_v7 = vadd.f32 %v2367_v62, %v3633_v31 }
 0x254   :  { %v2369_v44 = vpop.f32.mrf.mxu0 }
 0x255   :  { %v2370_v33 = vadd.f32 %v2369_v44, %v2368_v4  ;;  %2439 = vmatprep.mubr.bf16.mxu1 %v1782_v39  ;;  %v1768_v56 = vmax.f32 %v1712_v7, 0.0 }
 0x256   :  { %v2371_v23 = vpop.f32.mrf.mxu0 }
 0x257   :  { %v1715_v26 = vadd.f32 %v2370_v33, %v3633_v31 }
 0x258   :  { %v2372_v30 = vpop.f32.mrf.mxu0 }
 0x259   :  { %v1769_v36 = vmax.f32 %v1715_v26, 0.0  ;;  %v2373_v58 = vadd.f32 %v2372_v30, %v2371_v23 }
 0x25a   :  { %v2374_v17 = vpop.f32.mrf.mxu0 }
 0x25b   :  { %v1783_v34 = vpack.c.bf16 %v1769_v36, %v1768_v56  ;;  %v1720_v38 = vadd.f32 %v2373_v58, %v3633_v31 }
 0x25c   :  { %v2375_v28 = vpop.f32.mrf.mxu0 }
 0x25d   :  { %v2376_v6 = vadd.f32 %v2375_v28, %v2374_v17  ;;  %2440 = vmatmul.mubr.bf16.vlgmr.msra.gmra.mxu1 %v1783_v34  ;;  %v1770_v9 = vmax.f32 %v1720_v38, 0.0  ;;  %v3845_v34 = vlaneseq  ;;  %v2334_v38 = vld [vmem:[#allocation7] ss:$0 sm:$0xff] }
 0x25e   :  { %v2377_v12 = vpop.f32.mrf.mxu0 }
 0x25f   :  { %v1723_v45 = vadd.f32 %v2376_v6, %v3633_v31  ;;  %v3652_v28 = vand.u32 127, %v3845_v34 }
 0x260   :  { %v2378_v24 = vpop.f32.mrf.mxu0 }
 0x261   :  { %v1771_v0 = vmax.f32 %v1723_v45, 0.0  ;;  %v2379_v61 = vadd.f32 %v2378_v24, %v2377_v12  ;;  %vm1960_vm1 = vcmp.lt.s32.totalorder %v3652_v28, 10 }
 0x262   :  { %v2380_v16 = vpop.f32.mrf.mxu0 }
 0x263   :  { %v1784_v50 = vpack.c.bf16 %v1771_v0, %v1770_v9  ;;  %v1728_v37 = vadd.f32 %v2379_v61, %v3633_v31 }
 0x264   :  { %v2381_v20 = vpop.f32.mrf.mxu0 }
 0x265   :  { %v2382_v5 = vadd.f32 %v2381_v20, %v2380_v16  ;;  %2443 = vmatprep.mubr.bf16.mxu1 %v1784_v50  ;;  %v1772_v18 = vmax.f32 %v1728_v37, 0.0 }
 0x266   :  { %v2383_v52 = vpop.f32.mrf.mxu0 }
 0x267   :  { %v1731_v25 = vadd.f32 %v2382_v5, %v3633_v31 }
 0x268   :  { %v2384_v46 = vpop.f32.mrf.mxu0 }
 0x269   :  { %v1773_v40 = vmax.f32 %v1731_v25, 0.0  ;;  %v2385_v42 = vadd.f32 %v2384_v46, %v2383_v52 }
 0x26a   :  { %v2386_v60 = vpop.f32.mrf.mxu0 }
 0x26b   :  { %v1785_v51 = vpack.c.bf16 %v1773_v40, %v1772_v18  ;;  %v1736_v49 = vadd.f32 %v2385_v42, %v3633_v31 }
 0x26c   :  { %v2387_v43 = vpop.f32.mrf.mxu0 }
 0x26d   :  { %v2388_v8 = vadd.f32 %v2387_v43, %v2386_v60  ;;  %2444 = vmatmul.mubr.bf16.gmra.mxu1 %v1785_v51  ;;  %v1774_v41 = vmax.f32 %v1736_v49, 0.0 }
 0x26e   :  { %v2389_v47 = vpop.f32.mrf.mxu0 }
 0x26f   :  { %v1739_v59 = vadd.f32 %v2388_v8, %v3633_v31 }
 0x270   :  { %v2390_v15 = vpop.f32.mrf.mxu0 }
 0x271   :  { %v1775_v48 = vmax.f32 %v1739_v59, 0.0  ;;  %v2391_v1 = vadd.f32 %v2390_v15, %v2389_v47 }
 0x272   :  { %v2392_v21 = vpop.f32.mrf.mxu0 }
 0x273   :  { %v1786_v54 = vpack.c.bf16 %v1775_v48, %v1774_v41  ;;  %v1744_v19 = vadd.f32 %v2391_v1, %v3633_v31 }
 0x274   :  { %v2393_v13 = vpop.f32.mrf.mxu0 }
 0x275   :  { %v2394_v10 = vadd.f32 %v2393_v13, %v2392_v21  ;;  %2447 = vmatprep.mubr.bf16.mxu1 %v1786_v54  ;;  %v1776_v32 = vmax.f32 %v1744_v19, 0.0 }
 0x276   :  { %v2395_v29 = vpop.f32.mrf.mxu0 }
 0x277   :  { %v1747_v53 = vadd.f32 %v2394_v10, %v3633_v31 }
 0x278   :  { %v2396_v57 = vpop.f32.mrf.mxu0 }
 0x279   :  { %v1777_v55 = vmax.f32 %v1747_v53, 0.0  ;;  %v2397_v22 = vadd.f32 %v2396_v57, %v2395_v29 }
 0x27a   :  { %v2398_v2 = vpop.f32.mrf.mxu0 }
 0x27b   :  { %v1787_v63 = vpack.c.bf16 %v1777_v55, %v1776_v32  ;;  %v1752_v27 = vadd.f32 %v2397_v22, %v3633_v31 }
 0x27c   :  { %v2399_v14 = vpop.f32.mrf.mxu0 }
 0x27d   :  { %v2400_v11 = vadd.f32 %v2399_v14, %v2398_v2  ;;  %2448 = vmatmul.mubr.bf16.gmra.mxu1 %v1787_v63  ;;  %v1778_v4 = vmax.f32 %v1752_v27, 0.0 }
 0x27e   :  { %v2401_v35 = vpop.f32.mrf.mxu0 }
 0x27f   :  { %v1755_v3 = vadd.f32 %v2400_v11, %v3633_v31 }
 0x280   :  { %v2402_v62 = vpop.f32.mrf.mxu0 }
 0x281   :  { %v1779_v39 = vmax.f32 %v1755_v3, 0.0  ;;  %v2403_v44 = vadd.f32 %v2402_v62, %v2401_v35 }
 0x282   :  { %v2404_v7 = vpop.f32.mrf.mxu0 }
 0x283   :  { %v1788_v33 = vpack.c.bf16 %v1779_v39, %v1778_v4  ;;  %v1760_v26 = vadd.f32 %v2403_v44, %v3633_v31 }
 0x284   :  { %v2405_v23 = vpop.f32.mrf.mxu0 }
 0x285   :  { %v2406_v30 = vadd.f32 %v2405_v23, %v2404_v7  ;;  %2451 = vmatprep.mubr.bf16.mxu1 %v1788_v33  ;;  %v1780_v36 = vmax.f32 %v1760_v26, 0.0 }
 0x287   :  { %v1763_v56 = vadd.f32 %v2406_v30, %v3633_v31 }
 0x289   :  { %v1781_v58 = vmax.f32 %v1763_v56, 0.0 }
 0x28b   :  { %v1789_v17 = vpack.c.bf16 %v1781_v58, %v1780_v36 }
 0x28d   :  { %2452 = vmatmul.mubr.bf16.gmra.mxu1 %v1789_v17 }
 0x31d   :  { %v2441_v6 = vpop.f32.mrf.mxu1 }
 0x31e   :  { %v1904_v12 = vadd.f32 %v2441_v6, %v2334_v38 }
 0x31f   :  { %v1895_v45 = vpop.f32.mrf.mxu1 }
 0x320   :  { %v1896_v24 = vadd.f32 %v2334_v38, %v1895_v45  ;;  %v3657_v9 = vsel %vm1960_vm1, %v1904_v12, -1e+30 }
 0x321   :  { %1981 = vmax.xlane.f32.xlu1 %v3657_v9  ;;  %v2442_v31 = vpop.f32.mrf.mxu1 }
 0x322   :  { %v1907_v0 = vadd.f32 %v2442_v31, %v2334_v38  ;;  %v3662_v61 = vsel %vm1960_vm1, %v1896_v24, -1e+30 }
 0x323   :  { %v1898_v16 = vpop.f32.mrf.mxu1  ;;  %1977 = vmax.xlane.f32.xlu0 %v3662_v61 }
 0x324   :  { %v1899_v50 = vadd.f32 %v2334_v38, %v1898_v16  ;;  %v1964_v20 = vsel %vm1960_vm1, %v1907_v0, -1e+30 }
 0x325   :  { %1983 = vmax.xlane.f32.xlu1 %v1964_v20 }
 0x326   :  { %v3669_v37 = vsel %vm1960_vm1, %v1899_v50, -1e+30 }
 0x327   :  { %1979 = vmax.xlane.f32.xlu0 %v3669_v37 }
 0x32d   :  { %v2445_v5 = vpop.f32.mrf.mxu1 }
 0x32e   :  { %v1920_v52 = vadd.f32 %v2445_v5, %v2334_v38 }
 0x32f   :  { %v1911_v25 = vpop.f32.mrf.mxu1 }
 0x330   :  { %v1912_v46 = vadd.f32 %v2334_v38, %v1911_v25  ;;  %v3674_v18 = vsel %vm1960_vm1, %v1920_v52, -1e+30 }
 0x331   :  { %v2446_v40 = vpop.f32.mrf.mxu1  ;;  %1989 = vmax.xlane.f32.xlu0 %v3674_v18 }
 0x332   :  { %v1923_v42 = vadd.f32 %v2446_v40, %v2334_v38  ;;  %v3683_v49 = vsel %vm1960_vm1, %v1912_v46, -1e+30 }
 0x333   :  { %v1914_v60 = vpop.f32.mrf.mxu1 }
 0x334   :  { %v1915_v51 = vadd.f32 %v2334_v38, %v1914_v60  ;;  %v3679_v43 = vsel %vm1960_vm1, %v1923_v42, -1e+30 }
 0x335   :  { %1991 = vmax.xlane.f32.xlu1 %v3679_v43  ;;  %1985 = vmax.xlane.f32.xlu0 %v3683_v49 }
 0x336   :  { %v3689_v8 = vsel %vm1960_vm1, %v1915_v51, -1e+30 }
 0x339   :  { %1987 = vmax.xlane.f32.xlu1 %v3689_v8 }
 0x33d   :  { %v2449_v47 = vpop.f32.mrf.mxu1 }
 0x33e   :  { %v1936_v59 = vadd.f32 %v2449_v47, %v2334_v38 }
 0x33f   :  { %v1927_v15 = vpop.f32.mrf.mxu1 }
 0x340   :  { %v1928_v41 = vadd.f32 %v2334_v38, %v1927_v15  ;;  %v3694_v48 = vsel %vm1960_vm1, %v1936_v59, -1e+30 }
 0x341   :  { %v2450_v1 = vpop.f32.mrf.mxu1  ;;  %1997 = vmax.xlane.f32.xlu0 %v3694_v48 }
 0x342   :  { %v1939_v21 = vadd.f32 %v2450_v1, %v2334_v38  ;;  %v3703_v10 = vsel %vm1960_vm1, %v1928_v41, -1e+30 }
 0x343   :  { %v1930_v54 = vpop.f32.mrf.mxu1 }
 0x344   :  { %v1931_v13 = vadd.f32 %v2334_v38, %v1930_v54  ;;  %v3699_v19 = vsel %vm1960_vm1, %v1939_v21, -1e+30 }
 0x345   :  { %1999 = vmax.xlane.f32.xlu1 %v3699_v19  ;;  %1993 = vmax.xlane.f32.xlu0 %v3703_v10 }
 0x346   :  { %v3709_v29 = vsel %vm1960_vm1, %v1931_v13, -1e+30 }
 0x349   :  { %1995 = vmax.xlane.f32.xlu1 %v3709_v29 }
 0x34d   :  { %v2453_v53 = vpop.f32.mrf.mxu1 }
 0x34e   :  { %v1952_v22 = vadd.f32 %v2453_v53, %v2334_v38 }
 0x34f   :  { %v1943_v57 = vpop.f32.mrf.mxu1 }
 0x350   :  { %v1944_v32 = vadd.f32 %v2334_v38, %v1943_v57  ;;  %v3723_v35 = vsel %vm1960_vm1, %v1952_v22, -1e+30 }
 0x351   :  { %v2454_v55 = vpop.f32.mrf.mxu1 }
 0x352   :  { %v3714_v2 = vsel %vm1960_vm1, %v1944_v32, -1e+30  ;;  %v1955_v27 = vadd.f32 %v2454_v55, %v2334_v38 }
 0x353   :  { %v1946_v63 = vpop.f32.mrf.mxu1  ;;  %2001 = vmax.xlane.f32.xlu0 %v3714_v2 }
 0x354   :  { %v1947_v14 = vadd.f32 %v2334_v38, %v1946_v63  ;;  %v3729_v3 = vsel %vm1960_vm1, %v1955_v27, -1e+30 }
 0x356   :  { %v3719_v11 = vsel %vm1960_vm1, %v1947_v14, -1e+30 }
 0x357   :  { %2003 = vmax.xlane.f32.xlu1 %v3719_v11  ;;  %2005 = vmax.xlane.f32.xlu0 %v3723_v35 }
 0x35b   :  { %2007 = vmax.xlane.f32.xlu1 %v3729_v3 }
 0x3aa   :  { %v1982_v62 = vpop.xlane.xlu1 %1981 }
 0x3ab   :  { %v2011_v4 = vsub.f32 %v3657_v9, %v1982_v62 }
 0x3ac   :  { %v1978_v39 = vpop.xlane.xlu0 %1977 }
 0x3ad   :  { %v2029_v44 = vmul.f32 1.442695, %v2011_v4  ;;  %v2009_v7 = vsub.f32 %v3662_v61, %v1978_v39 }
 0x3ae   :  { %v1984_v33 = vpop.xlane.xlu1 %1983 }
 0x3af   :  { %2747 = vpow2.f32 %v2029_v44  ;;  %v2025_v23 = vmul.f32 1.442695, %v2009_v7  ;;  %v2012_v26 = vsub.f32 %v1964_v20, %v1984_v33 }
 0x3b0   :  { %v1980_v30 = vpop.xlane.xlu0 %1979 }
 0x3b1   :  { %v2031_v56 = vmul.f32 1.442695, %v2012_v26  ;;  %v2010_v36 = vsub.f32 %v3669_v37, %v1980_v30  ;;  %2749 = vpow2.f32 %v2025_v23 }
 0x3b3   :  { %2751 = vpow2.f32 %v2031_v56  ;;  %v2027_v58 = vmul.f32 1.442695, %v2010_v36 }
 0x3b5   :  { %2753 = vpow2.f32 %v2027_v58 }
 0x3ba   :  { %v1990_v17 = vpop.xlane.xlu0 %1989 }
 0x3bb   :  { %v2015_v34 = vsub.f32 %v3674_v18, %v1990_v17 }
 0x3bc   :  { %v3736_v28 = vpop.eup %2747 }
 0x3bd   :  { %v2037_v38 = vmul.f32 1.442695, %v2015_v34  ;;  %2061 = vadd.xlane.f32.xlu0 %v3736_v28 }
 0x3be   :  { %v1992_v6 = vpop.xlane.xlu1 %1991  ;;  %v1986_v12 = vpop.xlane.xlu0 %1985 }
 0x3bf   :  { %v3739_v45 = vpop.eup %2749  ;;  %2755 = vpow2.f32 %v2037_v38  ;;  %v2016_v24 = vsub.f32 %v3679_v43, %v1992_v6  ;;  %v2013_v9 = vsub.f32 %v3683_v49, %v1986_v12 }
 0x3c0   :  { %v3743_v31 = vpop.eup %2751 }
 0x3c1   :  { %v2039_v0 = vmul.f32 1.442695, %v2016_v24  ;;  %v2033_v61 = vmul.f32 1.442695, %v2013_v9  ;;  %2063 = vadd.xlane.f32.xlu1 %v3743_v31  ;;  %2057 = vadd.xlane.f32.xlu0 %v3739_v45 }
 0x3c2   :  { %v1988_v16 = vpop.xlane.xlu1 %1987  ;;  %v3748_v20 = vpop.eup %2753 }
 0x3c3   :  { %2757 = vpow2.f32 %v2039_v0  ;;  %v2014_v50 = vsub.f32 %v3689_v8, %v1988_v16 }
 0x3c4   :  { %2759 = vpow2.f32 %v2033_v61 }
 0x3c5   :  { %v2035_v37 = vmul.f32 1.442695, %v2014_v50  ;;  %2059 = vadd.xlane.f32.xlu1 %v3748_v20 }
 0x3c7   :  { %2761 = vpow2.f32 %v2035_v37 }
 0x3ca   :  { %v1998_v5 = vpop.xlane.xlu0 %1997 }
 0x3cb   :  { %v2019_v52 = vsub.f32 %v3694_v48, %v1998_v5 }
 0x3cc   :  { %v3752_v25 = vpop.eup %2755 }
 0x3cd   :  { %v2045_v46 = vmul.f32 1.442695, %v2019_v52  ;;  %2069 = vadd.xlane.f32.xlu0 %v3752_v25 }
 0x3ce   :  { %v2000_v18 = vpop.xlane.xlu1 %1999  ;;  %v1994_v40 = vpop.xlane.xlu0 %1993 }
 0x3cf   :  { %2763 = vpow2.f32 %v2045_v46  ;;  %v2020_v42 = vsub.f32 %v3699_v19, %v2000_v18  ;;  %v2017_v60 = vsub.f32 %v3703_v10, %v1994_v40 }
 0x3d0   :  { %v3757_v51 = vpop.eup %2757 }
 0x3d1   :  { %v3759_v43 = vpop.eup %2759  ;;  %v2047_v49 = vmul.f32 1.442695, %v2020_v42  ;;  %v2041_v8 = vmul.f32 1.442695, %v2017_v60  ;;  %2071 = vadd.xlane.f32.xlu1 %v3757_v51 }
 0x3d2   :  { %2065 = vadd.xlane.f32.xlu0 %v3759_v43  ;;  %v1996_v47 = vpop.xlane.xlu1 %1995 }
 0x3d3   :  { %2765 = vpow2.f32 %v2047_v49  ;;  %v2018_v59 = vsub.f32 %v3709_v29, %v1996_v47 }
 0x3d4   :  { %v3764_v15 = vpop.eup %2761  ;;  %2767 = vpow2.f32 %v2041_v8 }
 0x3d5   :  { %v2043_v41 = vmul.f32 1.442695, %v2018_v59  ;;  %2067 = vadd.xlane.f32.xlu1 %v3764_v15 }
 0x3d7   :  { %2769 = vpow2.f32 %v2043_v41 }
 0x3dc   :  { %v3767_v48 = vpop.eup %2763  ;;  %v2002_v1 = vpop.xlane.xlu0 %2001 }
 0x3dd   :  { %v2021_v21 = vsub.f32 %v3714_v2, %v2002_v1  ;;  %2077 = vadd.xlane.f32.xlu0 %v3767_v48 }
 0x3df   :  { %v2049_v54 = vmul.f32 1.442695, %v2021_v21 }
 0x3e0   :  { %v3771_v13 = vpop.eup %2765  ;;  %v2004_v19 = vpop.xlane.xlu1 %2003 }
 0x3e1   :  { %v2006_v10 = vpop.xlane.xlu0 %2005  ;;  %v3773_v29 = vpop.eup %2767  ;;  %2771 = vpow2.f32 %v2049_v54  ;;  %v2022_v53 = vsub.f32 %v3719_v11, %v2004_v19  ;;  %2079 = vadd.xlane.f32.xlu1 %v3771_v13 }
 0x3e2   :  { %v2023_v57 = vsub.f32 %v3723_v35, %v2006_v10  ;;  %2073 = vadd.xlane.f32.xlu0 %v3773_v29 }
 0x3e3   :  { %v2051_v32 = vmul.f32 1.442695, %v2022_v53 }
 0x3e4   :  { %v2053_v55 = vmul.f32 1.442695, %v2023_v57  ;;  %v3779_v22 = vpop.eup %2769  ;;  %v2008_v2 = vpop.xlane.xlu1 %2007 }
 0x3e5   :  { %2773 = vpow2.f32 %v2051_v32  ;;  %v2024_v63 = vsub.f32 %v3729_v3, %v2008_v2  ;;  %2075 = vadd.xlane.f32.xlu1 %v3779_v22 }
 0x3e6   :  { %2775 = vpow2.f32 %v2053_v55 }
 0x3e7   :  { %v2055_v14 = vmul.f32 1.442695, %v2024_v63 }
 0x3e9   :  { %2777 = vpow2.f32 %v2055_v14 }
 0x3ee   :  { %v3783_v27 = vpop.eup %2771 }
 0x3ef   :  { %2081 = vadd.xlane.f32.xlu0 %v3783_v27 }
 0x3f2   :  { %v3786_v11 = vpop.eup %2773 }
 0x3f3   :  { %v3788_v35 = vpop.eup %2775  ;;  %2083 = vadd.xlane.f32.xlu1 %v3786_v11 }
 0x3f4   :  { %2085 = vadd.xlane.f32.xlu0 %v3788_v35 }
 0x3f6   :  { %v3792_v62 = vpop.eup %2777 }
 0x3f7   :  { %2087 = vadd.xlane.f32.xlu1 %v3792_v62 }
 0x446   :  { %v2062_v3 = vpop.xlane.xlu0 %2061 }
 0x447   :  { %2779 = vrcp.f32 %v2062_v3 }
 0x44a   :  { %v2064_v4 = vpop.xlane.xlu1 %2063  ;;  %v2058_v39 = vpop.xlane.xlu0 %2057 }
 0x44b   :  { %2781 = vrcp.f32 %v2064_v4 }
 0x44c   :  { %2783 = vrcp.f32 %v2058_v39 }
 0x44e   :  { %v2060_v44 = vpop.xlane.xlu1 %2059 }
 0x44f   :  { %2785 = vrcp.f32 %v2060_v44 }
 0x454   :  { %v2780_v7 = vpop.eup %2779 }
 0x455   :  { %v2094_v33 = vmul.f32 %v2780_v7, %v3736_v28 }
 0x456   :  { %v2070_v23 = vpop.xlane.xlu0 %2069 }
 0x457   :  { %2123 = vst [vmem:[#allocation8 + $0x10] sm:$0xff] %v2094_v33  ;;  %2787 = vrcp.f32 %v2070_v23 }
 0x458   :  { %v2782_v26 = vpop.eup %2781 }
 0x459   :  { %v2784_v30 = vpop.eup %2783  ;;  %v2096_v56 = vmul.f32 %v2782_v26, %v3743_v31 }
 0x45a   :  { %v2090_v36 = vmul.f32 %v2784_v30, %v3739_v45  ;;  %v2072_v58 = vpop.xlane.xlu1 %2071 }
 0x45b   :  { %2124 = vst [vmem:[#allocation8 + $0x18] sm:$0xff] %v2096_v56  ;;  %2789 = vrcp.f32 %v2072_v58  ;;  %v2066_v17 = vpop.xlane.xlu0 %2065 }
 0x45c   :  { %v2786_v34 = vpop.eup %2785  ;;  %2121 = vst [vmem:[#allocation8] sm:$0xff] %v2090_v36  ;;  %2791 = vrcp.f32 %v2066_v17 }
 0x45d   :  { %v2092_v38 = vmul.f32 %v2786_v34, %v3748_v20 }
 0x45e   :  { %v2068_v6 = vpop.xlane.xlu1 %2067 }
 0x45f   :  { %2122 = vst [vmem:[#allocation8 + $0x8] sm:$0xff] %v2092_v38  ;;  %2793 = vrcp.f32 %v2068_v6 }
 0x464   :  { %v2788_v28 = vpop.eup %2787 }
 0x465   :  { %v2102_v12 = vmul.f32 %v2788_v28, %v3752_v25 }
 0x466   :  { %v2078_v24 = vpop.xlane.xlu0 %2077 }
 0x467   :  { %2127 = vst [vmem:[#allocation8 + $0x30] sm:$0xff] %v2102_v12  ;;  %2795 = vrcp.f32 %v2078_v24 }
 0x468   :  { %v2790_v9 = vpop.eup %2789 }
 0x469   :  { %v2792_v45 = vpop.eup %2791  ;;  %v2104_v31 = vmul.f32 %v2790_v9, %v3757_v51 }
 0x46a   :  { %v2098_v0 = vmul.f32 %v2792_v45, %v3759_v43  ;;  %v2080_v61 = vpop.xlane.xlu1 %2079 }
 0x46b   :  { %2128 = vst [vmem:[#allocation8 + $0x38] sm:$0xff] %v2104_v31  ;;  %2797 = vrcp.f32 %v2080_v61  ;;  %v2074_v16 = vpop.xlane.xlu0 %2073 }
 0x46c   :  { %v2794_v50 = vpop.eup %2793  ;;  %2125 = vst [vmem:[#allocation8 + $0x20] sm:$0xff] %v2098_v0  ;;  %2799 = vrcp.f32 %v2074_v16 }
 0x46d   :  { %v2100_v20 = vmul.f32 %v2794_v50, %v3764_v15 }
 0x46e   :  { %v2076_v37 = vpop.xlane.xlu1 %2075 }
 0x46f   :  { %2126 = vst [vmem:[#allocation8 + $0x28] sm:$0xff] %v2100_v20  ;;  %2801 = vrcp.f32 %v2076_v37 }
 0x474   :  { %v2796_v5 = vpop.eup %2795 }
 0x475   :  { %v2110_v52 = vmul.f32 %v2796_v5, %v3767_v48 }
 0x477   :  { %2131 = vst [vmem:[#allocation8 + $0x50] sm:$0xff] %v2110_v52 }
 0x478   :  { %v2798_v25 = vpop.eup %2797  ;;  %v2082_v46 = vpop.xlane.xlu0 %2081 }
 0x479   :  { %v2800_v18 = vpop.eup %2799  ;;  %v2112_v40 = vmul.f32 %v2798_v25, %v3771_v13  ;;  %2803 = vrcp.f32 %v2082_v46 }
 0x47a   :  { %v2106_v42 = vmul.f32 %v2800_v18, %v3773_v29 }
 0x47b   :  { %2132 = vst [vmem:[#allocation8 + $0x58] sm:$0xff] %v2112_v40 }
 0x47c   :  { %v2802_v60 = vpop.eup %2801  ;;  %2129 = vst [vmem:[#allocation8 + $0x40] sm:$0xff] %v2106_v42  ;;  %v2084_v51 = vpop.xlane.xlu1 %2083 }
 0x47d   :  { %v2108_v43 = vmul.f32 %v2802_v60, %v3779_v22  ;;  %2805 = vrcp.f32 %v2084_v51  ;;  %v2086_v49 = vpop.xlane.xlu0 %2085 }
 0x47e   :  { %2807 = vrcp.f32 %v2086_v49 }
 0x47f   :  { %2130 = vst [vmem:[#allocation8 + $0x48] sm:$0xff] %v2108_v43 }
 0x480   :  { %v2088_v8 = vpop.xlane.xlu1 %2087 }
 0x481   :  { %2809 = vrcp.f32 %v2088_v8 }
 0x486   :  { %v2804_v47 = vpop.eup %2803 }
 0x487   :  { %v2114_v59 = vmul.f32 %v2804_v47, %v3783_v27 }
 0x489   :  { %2133 = vst [vmem:[#allocation8 + $0x60] sm:$0xff] %v2114_v59 }
 0x48a   :  { %v2806_v15 = vpop.eup %2805 }
 0x48b   :  { %v2808_v41 = vpop.eup %2807  ;;  %v2116_v48 = vmul.f32 %v2806_v15, %v3786_v11 }
 0x48c   :  { %v2118_v1 = vmul.f32 %v2808_v41, %v3788_v35 }
 0x48d   :  { %2134 = vst [vmem:[#allocation8 + $0x68] sm:$0xff] %v2116_v48 }
 0x48e   :  { %v2810_v21 = vpop.eup %2809  ;;  %2135 = vst [vmem:[#allocation8 + $0x70] sm:$0xff] %v2118_v1 }
 0x48f   :  { %v2120_v54 = vmul.f32 %v2810_v21, %v3792_v62 }
 0x491   :  { %2136 = vst [vmem:[#allocation8 + $0x78] sm:$0xff] %v2120_v54 }
 0x492   :  { %2882 = shalt.err (!%p2879_p5)
}
 0x493   :  { %s2904_s28 = smov 128   ;;  %s2905_s29 = smov 8  }
 0x494   :  { %2148 = dma.vmem_to_hbm [thread:$0]  %s2143_s5, 2048, %s3821_s7, [#allocation4], %s2904_s28, %s2904_s28, %s2905_s29  }
 0x495   :  { %2895 = dma.done.wait [#allocation4], 2048  }
 0x496   :  { %2896 = vsyncadd [#allocation4], 4294965248 }
 0x497   :  { %2152 = vsyncpa [#allocation3], 1 }
 0x498   :  { %2153 = vsyncpa [#allocation6], 1 }
 0x499   :  { %2154 = vsyncpa [#allocation4], 1 }

</bundles_post_ra>
